<compile_context>
chip_gen: v6e
topology: v6e:2x2x1
jax: 0.10.0
libtpu: 0.0.40
codegen_flags: <defaults>
</compile_context>

<pallas_src>
import functools
import math

import jax
import jax.numpy as jnp
from jax.experimental import pallas as pl
from jax.experimental.pallas import tpu as pltpu


def _round_up(x, m):
    return ((x + m - 1) // m) * m


# ----------------------------------------------------------------------------
# Single fused kernel: whole forward pass for one batch element per grid step.
# ----------------------------------------------------------------------------

def _fused_transformer_kernel(
    src_ref,      # [1, S, 1] int32   (this batch's token ids)
    emb_ref,      # [n_tokens, D]
    pe_ref,       # [S, D]
    mask_ref,     # [S, S] additive float mask
    in_w_ref,     # [L, D, 3D]
    in_b_ref,     # [L, 1, 3D]
    out_w_ref,    # [L, D, D]
    out_b_ref,    # [L, 1, D]
    l1_w_ref,     # [L, D, Dh]
    l1_b_ref,     # [L, 1, Dh]
    l2_w_ref,     # [L, Dh, D]
    l2_b_ref,     # [L, 1, D]
    n1_g_ref, n1_b_ref, n2_g_ref, n2_b_ref,   # [L, 1, D] each
    dec_w_ref,    # [D, Np]   (lane-padded decoder weight, zeros past n_tokens)
    dec_b_ref,    # [1, Np]
    o_ref,        # [1, S, Np]
    *, n_layers, n_heads, d_model, n_tokens, eps,
):
    S = mask_ref.shape[0]
    Hd = d_model // n_heads
    scale = 1.0 / math.sqrt(Hd)

    # --- embedding lookup as one-hot matmul (MXU), fused with *sqrt(d) + PE ---
    ids = src_ref[0]                                            # [S, 1] int32
    iota = jax.lax.broadcasted_iota(jnp.int32, (S, n_tokens), 1)
    onehot = (iota == ids).astype(jnp.float32)                  # [S, n_tokens]
    x = jnp.dot(onehot, emb_ref[...], preferred_element_type=jnp.float32)
    x = x * math.sqrt(d_model) + pe_ref[...]                    # [S, D]

    mask = mask_ref[...]

    def layer_norm(y, g, b):
        mu = jnp.mean(y, axis=-1, keepdims=True)
        var = jnp.mean((y - mu) ** 2, axis=-1, keepdims=True)
        return (y - mu) * jax.lax.rsqrt(var + eps) * g + b

    # Static unroll over layers; all stacked weights are already VMEM-resident.
    for l in range(n_layers):
        w_in, b_in = in_w_ref[l], in_b_ref[l]
        w_out, b_out = out_w_ref[l], out_b_ref[l]
        w1, b1 = l1_w_ref[l], l1_b_ref[l]
        w2, b2 = l2_w_ref[l], l2_b_ref[l]

        # ---------------- self attention (all heads, no HBM traffic) ---------
        qkv = jnp.dot(x, w_in, preferred_element_type=jnp.float32) + b_in  # [S, 3D]
        attn = jnp.zeros_like(x)
        for h in range(n_heads):
            lo = h * Hd
            qh = qkv[:, lo:lo + Hd] * scale
            kh = qkv[:, d_model + lo:d_model + lo + Hd]
            vh = qkv[:, 2 * d_model + lo:2 * d_model + lo + Hd]
            # q @ k^T via dot_general contracting last dims (no transpose op).
            s = jax.lax.dot_general(qh, kh, (((1,), (1,)), ((), ())),
                                    preferred_element_type=jnp.float32)
            s = s + mask
            s = s - jnp.max(s, axis=-1, keepdims=True)
            p = jnp.exp(s)
            p = p * pl.reciprocal(jnp.sum(p, axis=-1, keepdims=True), approx=True)
            ctx_h = jnp.dot(p, vh, preferred_element_type=jnp.float32)     # [S, Hd]
            # Head merge fused into out_proj: concat(ctx_h) @ W == sum_h ctx_h @ W[h].
            attn = attn + jnp.dot(ctx_h, w_out[lo:lo + Hd, :],
                                  preferred_element_type=jnp.float32)
        attn = attn + b_out
        x = layer_norm(x + attn, n1_g_ref[l], n1_b_ref[l])

        # ---------------- feed forward (bias+relu fused epilogue) ------------
        hdn = jnp.maximum(
            jnp.dot(x, w1, preferred_element_type=jnp.float32) + b1, 0.0)
        ffn = jnp.dot(hdn, w2, preferred_element_type=jnp.float32) + b2
        x = layer_norm(x + ffn, n2_g_ref[l], n2_b_ref[l])

    # ------------- decoder head (lane-padded -> unmasked vector stores) ------
    out = jnp.dot(x, dec_w_ref[...], preferred_element_type=jnp.float32) + dec_b_ref[...]
    o_ref[0] = out.astype(o_ref.dtype)


# ----------------------------------------------------------------------------
# Wrapper: one pallas_call for the whole model.
# ----------------------------------------------------------------------------

def transformer_model_forward(params, src, src_mask, *, n_heads):
    """src: int32 [S, B]; src_mask: float32 [S, S]. Returns [S, B, n_tokens]."""
    S, B = src.shape
    n_tokens, D = params["embedding"].shape
    L = params["in_proj_w_t"].shape[0]
    Dh = params["linear1_w_t"].shape[2]
    Np = params["decoder_w_t_pad"].shape[1]

    src_b = jnp.swapaxes(src, 0, 1).reshape(B, S, 1).astype(jnp.int32)  # [B, S, 1]
    pe = params["pe"][:S]
    mask = src_mask.astype(jnp.float32)

    kernel = functools.partial(
        _fused_transformer_kernel,
        n_layers=L, n_heads=n_heads, d_model=D, n_tokens=n_tokens, eps=1e-5)

    def full(*shape):
        # Whole-array block, resident across all grid steps (fetched once).
        return pl.BlockSpec(shape, lambda b, _s=shape: (0,) * len(_s))

    out_padded = pl.pallas_call(
        kernel,
        out_shape=jax.ShapeDtypeStruct((B, S, Np), jnp.float32),
        grid=(B,),
        in_specs=[
            pl.BlockSpec((1, S, 1), lambda b: (b, 0, 0)),   # token ids for batch b
            full(n_tokens, D),                               # embedding table
            full(S, D),                                      # positional encoding
            full(S, S),                                      # attention mask
            full(L, D, 3 * D), full(L, 1, 3 * D),            # in_proj
            full(L, D, D), full(L, 1, D),                    # out_proj
            full(L, D, Dh), full(L, 1, Dh),                  # linear1
            full(L, Dh, D), full(L, 1, D),                   # linear2
            full(L, 1, D), full(L, 1, D),                    # norm1 gamma/beta
            full(L, 1, D), full(L, 1, D),                    # norm2 gamma/beta
            full(D, Np), full(1, Np),                        # decoder (padded)
        ],
        out_specs=pl.BlockSpec((1, S, Np), lambda b: (b, 0, 0)),
        compiler_params=pltpu.CompilerParams(
            dimension_semantics=("parallel",)),              # v7x: shard batches over 2 TCs
    )(
        src_b, params["embedding"], pe, mask,
        params["in_proj_w_t"], params["in_proj_b"],
        params["out_proj_w_t"], params["out_proj_b"],
        params["linear1_w_t"], params["linear1_b"],
        params["linear2_w_t"], params["linear2_b"],
        params["norm1_g"], params["norm1_b"],
        params["norm2_g"], params["norm2_b"],
        params["decoder_w_t_pad"], params["decoder_b_pad"],
    )

    # Strip lane padding, restore [S, B, n_tokens] (seq-major, like PyTorch).
    return jnp.swapaxes(out_padded[:, :, :n_tokens], 0, 1)


# ----------------------------------------------------------------------------
# Pure-JAX reference (for a self-check of the fused kernel).
# ----------------------------------------------------------------------------

def _layernorm_ref(y, g, b, eps=1e-5):
    mu = jnp.mean(y, axis=-1, keepdims=True)
    var = jnp.mean((y - mu) ** 2, axis=-1, keepdims=True)
    return (y - mu) * jax.lax.rsqrt(var + eps) * g + b


def reference_forward(params, src, src_mask, *, n_heads):
    S, B = src.shape
    n_tokens, D = params["embedding"].shape
    H, Hd = n_heads, D // n_heads
    L = params["in_proj_w_t"].shape[0]

    x = jnp.take(params["embedding"], src, axis=0) * math.sqrt(D)
    x = x + params["pe"][:S][:, None, :]
    for l in range(L):
        qkv = x @ params["in_proj_w_t"][l] + params["in_proj_b"][l][0]
        q, k, v = jnp.split(qkv, 3, axis=-1)
        sh = lambda t: t.reshape(S, B, H, Hd).transpose(1, 2, 0, 3)   # [B,H,S,Hd]
        qh, kh, vh = sh(q), sh(k), sh(v)
        s = jnp.einsum("bhqd,bhkd->bhqk", qh, kh) / math.sqrt(Hd) + src_mask
        p = jax.nn.softmax(s, axis=-1)
        ctx = jnp.einsum("bhqk,bhkd->bhqd", p, vh).transpose(2, 0, 1, 3).reshape(S, B, D)
        attn = ctx @ params["out_proj_w_t"][l] + params["out_proj_b"][l][0]
        x = _layernorm_ref(x + attn, params["norm1_g"][l][0], params["norm1_b"][l][0])
        h1 = jax.nn.relu(x @ params["linear1_w_t"][l] + params["linear1_b"][l][0])
        ffn = h1 @ params["linear2_w_t"][l] + params["linear2_b"][l][0]
        x = _layernorm_ref(x + ffn, params["norm2_g"][l][0], params["norm2_b"][l][0])
    return x @ params["decoder_w_t_pad"][:, :n_tokens] + params["decoder_b_pad"][0, :n_tokens]


# ----------------------------------------------------------------------------
# Deterministic parameter initialization (synthetic, mirrors module shapes)
# ----------------------------------------------------------------------------

def init_params(key, n_tokens, d_model, d_hid, n_layers, max_len=64):
    keys = jax.random.split(key, 2 + 4 * n_layers)
    ki = iter(keys)

    def unif(k, shape, r):
        return jax.random.uniform(k, shape, jnp.float32, minval=-r, maxval=r)

    params = {"embedding": unif(next(ki), (n_tokens, d_model), 0.1)}

    # Decoder weight [n_tokens, d_model] (torch layout), stored transposed and
    # lane-padded to a multiple of 128 (zeros beyond n_tokens).
    dec_w = unif(next(ki), (n_tokens, d_model), 0.1)
    n_pad = _round_up(n_tokens, 128)
    params["decoder_w_t_pad"] = (
        jnp.zeros((d_model, n_pad), jnp.float32).at[:, :n_tokens].set(dec_w.T))
    params["decoder_b_pad"] = jnp.zeros((1, n_pad), jnp.float32)

    # Sinusoidal positional encoding table [max_len, d_model].
    position = jnp.arange(max_len, dtype=jnp.float32)[:, None]
    div_term = jnp.exp(jnp.arange(0, d_model, 2, dtype=jnp.float32)
                       * (-math.log(10000.0) / d_model))
    pe = jnp.zeros((max_len, d_model), jnp.float32)
    pe = pe.at[:, 0::2].set(jnp.sin(position * div_term))
    pe = pe.at[:, 1::2].set(jnp.cos(position * div_term))
    params["pe"] = pe

    r_attn = 1.0 / math.sqrt(d_model)
    r_ff1 = 1.0 / math.sqrt(d_model)
    r_ff2 = 1.0 / math.sqrt(d_hid)
    in_w, out_w, l1_w, l2_w = [], [], [], []
    for _ in range(n_layers):
        # stored pre-transposed ([in, out]) so the kernel computes y = x @ w + b
        in_w.append(unif(next(ki), (3 * d_model, d_model), r_attn).T)   # [D, 3D]
        out_w.append(unif(next(ki), (d_model, d_model), r_attn).T)      # [D, D]
        l1_w.append(unif(next(ki), (d_hid, d_model), r_ff1).T)          # [D, Dh]
        l2_w.append(unif(next(ki), (d_model, d_hid), r_ff2).T)          # [Dh, D]

    L = n_layers
    params.update({
        "in_proj_w_t": jnp.stack(in_w),
        "in_proj_b": jnp.zeros((L, 1, 3 * d_model), jnp.float32),
        "out_proj_w_t": jnp.stack(out_w),
        "out_proj_b": jnp.zeros((L, 1, d_model), jnp.float32),
        "linear1_w_t": jnp.stack(l1_w),
        "linear1_b": jnp.zeros((L, 1, d_hid), jnp.float32),
        "linear2_w_t": jnp.stack(l2_w),
        "linear2_b": jnp.zeros((L, 1, d_model), jnp.float32),
        "norm1_g": jnp.ones((L, 1, d_model), jnp.float32),
        "norm1_b": jnp.zeros((L, 1, d_model), jnp.float32),
        "norm2_g": jnp.ones((L, 1, d_model), jnp.float32),
        "norm2_b": jnp.zeros((L, 1, d_model), jnp.float32),
    })
    return params


# ----------------------------------------------------------------------------
# Driver
# ----------------------------------------------------------------------------

if __name__ == "__main__":
    S, B = 8, 2              # seq_len, batch_size
    n_tokens = 48
    d_model = 32
    n_heads = 4
    d_hid = 64
    n_layers = 2

    key = jax.random.PRNGKey(0)
    k_param, k_src = jax.random.split(key)

    params = init_params(k_param, n_tokens, d_model, d_hid, n_layers)

    src = jax.random.randint(k_src, (S, B), 0, n_tokens, dtype=jnp.int32)
    # Causal additive mask, as produced by generate_square_subsequent_mask.
    idx = jnp.arange(S)
    src_mask = jnp.where(idx[None, :] <= idx[:, None], 0.0, -1e9).astype(jnp.float32)

    fwd = jax.jit(functools.partial(transformer_model_forward, n_heads=n_heads))
    out = jax.block_until_ready(fwd(params, src, src_mask))

    assert out.shape == (S, B, n_tokens), out.shape
    assert bool(jnp.all(jnp.isfinite(out)))

    # Self-check against a pure-JAX reference (loose tol: approx reciprocal + fp reorder).
    ref = reference_forward(params, src, src_mask, n_heads=n_heads)
    assert bool(jnp.allclose(out, ref, atol=3e-2, rtol=3e-2)), \
        float(jnp.max(jnp.abs(out - ref)))

    print("KERNEL_OK")
</pallas_src>

<mosaic_0001>
module attributes {stable_mosaic.version = 11 : i64} {
  func.func @_fused_transformer_kernel(%arg0: i32, %arg1: memref<1x8x1xi32, #tpu.memory_space<vmem>>, %arg2: memref<48x32xf32, #tpu.memory_space<vmem>>, %arg3: memref<8x32xf32, #tpu.memory_space<vmem>>, %arg4: memref<8x8xf32, #tpu.memory_space<vmem>>, %arg5: memref<2x32x96xf32, #tpu.memory_space<vmem>>, %arg6: memref<2x1x96xf32, #tpu.memory_space<vmem>>, %arg7: memref<2x32x32xf32, #tpu.memory_space<vmem>>, %arg8: memref<2x1x32xf32, #tpu.memory_space<vmem>>, %arg9: memref<2x32x64xf32, #tpu.memory_space<vmem>>, %arg10: memref<2x1x64xf32, #tpu.memory_space<vmem>>, %arg11: memref<2x64x32xf32, #tpu.memory_space<vmem>>, %arg12: memref<2x1x32xf32, #tpu.memory_space<vmem>>, %arg13: memref<2x1x32xf32, #tpu.memory_space<vmem>>, %arg14: memref<2x1x32xf32, #tpu.memory_space<vmem>>, %arg15: memref<2x1x32xf32, #tpu.memory_space<vmem>>, %arg16: memref<2x1x32xf32, #tpu.memory_space<vmem>>, %arg17: memref<32x128xf32, #tpu.memory_space<vmem>>, %arg18: memref<1x128xf32, #tpu.memory_space<vmem>>, %arg19: memref<1x8x128xf32, #tpu.memory_space<vmem>>) attributes {dimension_semantics = [#tpu.dimension_semantics<parallel>], iteration_bounds = array<i64: 2>, scalar_prefetch = 0 : i64, scratch_operands = 0 : i64, tpu.core_type = #tpu.core_type<tc>, window_params = [{transform_indices = @transform_0, window_bounds = array<i64: 1, 8, 1>}, {pipeline_mode = #tpu.pipeline_mode<synchronous>, transform_indices = @transform_1, window_bounds = array<i64: 48, 32>}, {pipeline_mode = #tpu.pipeline_mode<synchronous>, transform_indices = @transform_2, window_bounds = array<i64: 8, 32>}, {pipeline_mode = #tpu.pipeline_mode<synchronous>, transform_indices = @transform_3, window_bounds = array<i64: 8, 8>}, {pipeline_mode = #tpu.pipeline_mode<synchronous>, transform_indices = @transform_4, window_bounds = array<i64: 2, 32, 96>}, {pipeline_mode = #tpu.pipeline_mode<synchronous>, transform_indices = @transform_5, window_bounds = array<i64: 2, 1, 96>}, {pipeline_mode = #tpu.pipeline_mode<synchronous>, transform_indices = @transform_6, window_bounds = array<i64: 2, 32, 32>}, {pipeline_mode = #tpu.pipeline_mode<synchronous>, transform_indices = @transform_7, window_bounds = array<i64: 2, 1, 32>}, {pipeline_mode = #tpu.pipeline_mode<synchronous>, transform_indices = @transform_8, window_bounds = array<i64: 2, 32, 64>}, {pipeline_mode = #tpu.pipeline_mode<synchronous>, transform_indices = @transform_9, window_bounds = array<i64: 2, 1, 64>}, {pipeline_mode = #tpu.pipeline_mode<synchronous>, transform_indices = @transform_10, window_bounds = array<i64: 2, 64, 32>}, {pipeline_mode = #tpu.pipeline_mode<synchronous>, transform_indices = @transform_11, window_bounds = array<i64: 2, 1, 32>}, {pipeline_mode = #tpu.pipeline_mode<synchronous>, transform_indices = @transform_12, window_bounds = array<i64: 2, 1, 32>}, {pipeline_mode = #tpu.pipeline_mode<synchronous>, transform_indices = @transform_13, window_bounds = array<i64: 2, 1, 32>}, {pipeline_mode = #tpu.pipeline_mode<synchronous>, transform_indices = @transform_14, window_bounds = array<i64: 2, 1, 32>}, {pipeline_mode = #tpu.pipeline_mode<synchronous>, transform_indices = @transform_15, window_bounds = array<i64: 2, 1, 32>}, {pipeline_mode = #tpu.pipeline_mode<synchronous>, transform_indices = @transform_16, window_bounds = array<i64: 32, 128>}, {pipeline_mode = #tpu.pipeline_mode<synchronous>, transform_indices = @transform_17, window_bounds = array<i64: 1, 128>}, {transform_indices = @transform_18, window_bounds = array<i64: 1, 8, 128>}]} {
    %c0 = arith.constant 0 : index
    %c0_0 = arith.constant 0 : index
    %c0_1 = arith.constant 0 : index
    %0 = vector.load %arg1[%c0, %c0_0, %c0_1] : memref<1x8x1xi32, #tpu.memory_space<vmem>>, vector<1x8x1xi32>
    %1 = vector.shape_cast %0 : vector<1x8x1xi32> to vector<8x1xi32>
    %2 = tpu.iota {dimensions = array<i32: 1>} : vector<8x48xi32>
    %3 = vector.broadcast %1 : vector<8x1xi32> to vector<8x48xi32>
    %4 = arith.cmpi eq, %2, %3 : vector<8x48xi32>
    %5 = arith.extui %4 : vector<8x48xi1> to vector<8x48xi32>
    %6 = arith.sitofp %5 : vector<8x48xi32> to vector<8x48xf32>
    %c0_2 = arith.constant 0 : index
    %c0_3 = arith.constant 0 : index
    %7 = vector.load %arg2[%c0_2, %c0_3] : memref<48x32xf32, #tpu.memory_space<vmem>>, vector<48x32xf32>
    %cst = arith.constant dense<0.000000e+00> : vector<8x32xf32>
    %8 = tpu.matmul %6, %7, %cst {dimension_numbers = #tpu.dot_dimension_numbers<[1], [0], [0], [1], [0, 0, 1, 1], [], []>} : vector<8x48xf32>, vector<48x32xf32>, vector<8x32xf32> -> vector<8x32xf32>
    %cst_4 = arith.constant 5.65685415 : f32
    %9 = vector.broadcast %cst_4 : f32 to vector<8x32xf32>
    %10 = arith.mulf %8, %9 : vector<8x32xf32>
    %c0_5 = arith.constant 0 : index
    %c0_6 = arith.constant 0 : index
    %11 = vector.load %arg3[%c0_5, %c0_6] : memref<8x32xf32, #tpu.memory_space<vmem>>, vector<8x32xf32>
    %12 = arith.addf %10, %11 : vector<8x32xf32>
    %c0_7 = arith.constant 0 : index
    %c0_8 = arith.constant 0 : index
    %13 = vector.load %arg4[%c0_7, %c0_8] : memref<8x8xf32, #tpu.memory_space<vmem>>, vector<8x8xf32>
    %c0_9 = arith.constant 0 : index
    %c0_10 = arith.constant 0 : index
    %c0_11 = arith.constant 0 : index
    %14 = vector.load %arg5[%c0_9, %c0_10, %c0_11] : memref<2x32x96xf32, #tpu.memory_space<vmem>>, vector<1x32x96xf32>
    %15 = vector.shape_cast %14 : vector<1x32x96xf32> to vector<32x96xf32>
    %c0_12 = arith.constant 0 : index
    %c0_13 = arith.constant 0 : index
    %c0_14 = arith.constant 0 : index
    %16 = vector.load %arg6[%c0_12, %c0_13, %c0_14] : memref<2x1x96xf32, #tpu.memory_space<vmem>>, vector<1x1x96xf32>
    %17 = vector.shape_cast %16 : vector<1x1x96xf32> to vector<1x96xf32>
    %c0_15 = arith.constant 0 : index
    %c0_16 = arith.constant 0 : index
    %c0_17 = arith.constant 0 : index
    %18 = vector.load %arg7[%c0_15, %c0_16, %c0_17] : memref<2x32x32xf32, #tpu.memory_space<vmem>>, vector<1x32x32xf32>
    %19 = vector.shape_cast %18 : vector<1x32x32xf32> to vector<32x32xf32>
    %c0_18 = arith.constant 0 : index
    %c0_19 = arith.constant 0 : index
    %c0_20 = arith.constant 0 : index
    %20 = vector.load %arg8[%c0_18, %c0_19, %c0_20] : memref<2x1x32xf32, #tpu.memory_space<vmem>>, vector<1x1x32xf32>
    %21 = vector.shape_cast %20 : vector<1x1x32xf32> to vector<1x32xf32>
    %c0_21 = arith.constant 0 : index
    %c0_22 = arith.constant 0 : index
    %c0_23 = arith.constant 0 : index
    %22 = vector.load %arg9[%c0_21, %c0_22, %c0_23] : memref<2x32x64xf32, #tpu.memory_space<vmem>>, vector<1x32x64xf32>
    %23 = vector.shape_cast %22 : vector<1x32x64xf32> to vector<32x64xf32>
    %c0_24 = arith.constant 0 : index
    %c0_25 = arith.constant 0 : index
    %c0_26 = arith.constant 0 : index
    %24 = vector.load %arg10[%c0_24, %c0_25, %c0_26] : memref<2x1x64xf32, #tpu.memory_space<vmem>>, vector<1x1x64xf32>
    %25 = vector.shape_cast %24 : vector<1x1x64xf32> to vector<1x64xf32>
    %c0_27 = arith.constant 0 : index
    %c0_28 = arith.constant 0 : index
    %c0_29 = arith.constant 0 : index
    %26 = vector.load %arg11[%c0_27, %c0_28, %c0_29] : memref<2x64x32xf32, #tpu.memory_space<vmem>>, vector<1x64x32xf32>
    %27 = vector.shape_cast %26 : vector<1x64x32xf32> to vector<64x32xf32>
    %c0_30 = arith.constant 0 : index
    %c0_31 = arith.constant 0 : index
    %c0_32 = arith.constant 0 : index
    %28 = vector.load %arg12[%c0_30, %c0_31, %c0_32] : memref<2x1x32xf32, #tpu.memory_space<vmem>>, vector<1x1x32xf32>
    %29 = vector.shape_cast %28 : vector<1x1x32xf32> to vector<1x32xf32>
    %cst_33 = arith.constant dense<0.000000e+00> : vector<8x96xf32>
    %30 = tpu.matmul %12, %15, %cst_33 {dimension_numbers = #tpu.dot_dimension_numbers<[1], [0], [0], [1], [0, 0, 1, 1], [], []>} : vector<8x32xf32>, vector<32x96xf32>, vector<8x96xf32> -> vector<8x96xf32>
    %31 = vector.broadcast %17 : vector<1x96xf32> to vector<8x96xf32>
    %32 = arith.addf %30, %31 : vector<8x96xf32>
    %cst_34 = arith.constant 0.000000e+00 : f32
    %33 = vector.broadcast %cst_34 : f32 to vector<8x32xf32>
    %34 = vector.extract_strided_slice %32 {offsets = [0, 0], sizes = [8, 8], strides = [1, 1]} : vector<8x96xf32> to vector<8x8xf32>
    %cst_35 = arith.constant 0.353553385 : f32
    %35 = vector.broadcast %cst_35 : f32 to vector<8x8xf32>
    %36 = arith.mulf %34, %35 : vector<8x8xf32>
    %37 = vector.extract_strided_slice %32 {offsets = [0, 32], sizes = [8, 8], strides = [1, 1]} : vector<8x96xf32> to vector<8x8xf32>
    %38 = vector.extract_strided_slice %32 {offsets = [0, 64], sizes = [8, 8], strides = [1, 1]} : vector<8x96xf32> to vector<8x8xf32>
    %cst_36 = arith.constant dense<0.000000e+00> : vector<8x8xf32>
    %39 = tpu.matmul %36, %37, %cst_36 {dimension_numbers = #tpu.dot_dimension_numbers<[1], [1], [0], [0], [0, 0, 1, 0], [], []>} : vector<8x8xf32>, vector<8x8xf32>, vector<8x8xf32> -> vector<8x8xf32>
    %40 = arith.addf %39, %13 : vector<8x8xf32>
    %cst_37 = arith.constant dense<0xFF800000> : vector<8xf32>
    %41 = vector.multi_reduction <maximumf>, %40, %cst_37 [1] : vector<8x8xf32> to vector<8xf32>
    %42 = vector.shape_cast %41 : vector<8xf32> to vector<8x1xf32>
    %43 = vector.broadcast %42 : vector<8x1xf32> to vector<8x8xf32>
    %44 = arith.subf %40, %43 : vector<8x8xf32>
    %45 = math.exp %44 : vector<8x8xf32>
    %cst_38 = arith.constant dense<0.000000e+00> : vector<8xf32>
    %46 = vector.multi_reduction <add>, %45, %cst_38 [1] : vector<8x8xf32> to vector<8xf32>
    %47 = vector.shape_cast %46 : vector<8xf32> to vector<8x1xf32>
    %48 = tpu.reciprocal %47 {approx = true} : vector<8x1xf32> -> vector<8x1xf32>
    %49 = vector.broadcast %48 : vector<8x1xf32> to vector<8x8xf32>
    %50 = arith.mulf %45, %49 : vector<8x8xf32>
    %cst_39 = arith.constant dense<0.000000e+00> : vector<8x8xf32>
    %51 = tpu.matmul %50, %38, %cst_39 {dimension_numbers = #tpu.dot_dimension_numbers<[1], [0], [0], [1], [0, 0, 1, 1], [], []>} : vector<8x8xf32>, vector<8x8xf32>, vector<8x8xf32> -> vector<8x8xf32>
    %52 = vector.extract_strided_slice %19 {offsets = [0, 0], sizes = [8, 32], strides = [1, 1]} : vector<32x32xf32> to vector<8x32xf32>
    %cst_40 = arith.constant dense<0.000000e+00> : vector<8x32xf32>
    %53 = tpu.matmul %51, %52, %cst_40 {dimension_numbers = #tpu.dot_dimension_numbers<[1], [0], [0], [1], [0, 0, 1, 1], [], []>} : vector<8x8xf32>, vector<8x32xf32>, vector<8x32xf32> -> vector<8x32xf32>
    %54 = arith.addf %33, %53 : vector<8x32xf32>
    %55 = vector.extract_strided_slice %32 {offsets = [0, 8], sizes = [8, 8], strides = [1, 1]} : vector<8x96xf32> to vector<8x8xf32>
    %cst_41 = arith.constant 0.353553385 : f32
    %56 = vector.broadcast %cst_41 : f32 to vector<8x8xf32>
    %57 = arith.mulf %55, %56 : vector<8x8xf32>
    %58 = vector.extract_strided_slice %32 {offsets = [0, 40], sizes = [8, 8], strides = [1, 1]} : vector<8x96xf32> to vector<8x8xf32>
    %59 = vector.extract_strided_slice %32 {offsets = [0, 72], sizes = [8, 8], strides = [1, 1]} : vector<8x96xf32> to vector<8x8xf32>
    %cst_42 = arith.constant dense<0.000000e+00> : vector<8x8xf32>
    %60 = tpu.matmul %57, %58, %cst_42 {dimension_numbers = #tpu.dot_dimension_numbers<[1], [1], [0], [0], [0, 0, 1, 0], [], []>} : vector<8x8xf32>, vector<8x8xf32>, vector<8x8xf32> -> vector<8x8xf32>
    %61 = arith.addf %60, %13 : vector<8x8xf32>
    %cst_43 = arith.constant dense<0xFF800000> : vector<8xf32>
    %62 = vector.multi_reduction <maximumf>, %61, %cst_43 [1] : vector<8x8xf32> to vector<8xf32>
    %63 = vector.shape_cast %62 : vector<8xf32> to vector<8x1xf32>
    %64 = vector.broadcast %63 : vector<8x1xf32> to vector<8x8xf32>
    %65 = arith.subf %61, %64 : vector<8x8xf32>
    %66 = math.exp %65 : vector<8x8xf32>
    %cst_44 = arith.constant dense<0.000000e+00> : vector<8xf32>
    %67 = vector.multi_reduction <add>, %66, %cst_44 [1] : vector<8x8xf32> to vector<8xf32>
    %68 = vector.shape_cast %67 : vector<8xf32> to vector<8x1xf32>
    %69 = tpu.reciprocal %68 {approx = true} : vector<8x1xf32> -> vector<8x1xf32>
    %70 = vector.broadcast %69 : vector<8x1xf32> to vector<8x8xf32>
    %71 = arith.mulf %66, %70 : vector<8x8xf32>
    %cst_45 = arith.constant dense<0.000000e+00> : vector<8x8xf32>
    %72 = tpu.matmul %71, %59, %cst_45 {dimension_numbers = #tpu.dot_dimension_numbers<[1], [0], [0], [1], [0, 0, 1, 1], [], []>} : vector<8x8xf32>, vector<8x8xf32>, vector<8x8xf32> -> vector<8x8xf32>
    %73 = vector.extract_strided_slice %19 {offsets = [8, 0], sizes = [8, 32], strides = [1, 1]} : vector<32x32xf32> to vector<8x32xf32>
    %cst_46 = arith.constant dense<0.000000e+00> : vector<8x32xf32>
    %74 = tpu.matmul %72, %73, %cst_46 {dimension_numbers = #tpu.dot_dimension_numbers<[1], [0], [0], [1], [0, 0, 1, 1], [], []>} : vector<8x8xf32>, vector<8x32xf32>, vector<8x32xf32> -> vector<8x32xf32>
    %75 = arith.addf %54, %74 : vector<8x32xf32>
    %76 = vector.extract_strided_slice %32 {offsets = [0, 16], sizes = [8, 8], strides = [1, 1]} : vector<8x96xf32> to vector<8x8xf32>
    %cst_47 = arith.constant 0.353553385 : f32
    %77 = vector.broadcast %cst_47 : f32 to vector<8x8xf32>
    %78 = arith.mulf %76, %77 : vector<8x8xf32>
    %79 = vector.extract_strided_slice %32 {offsets = [0, 48], sizes = [8, 8], strides = [1, 1]} : vector<8x96xf32> to vector<8x8xf32>
    %80 = vector.extract_strided_slice %32 {offsets = [0, 80], sizes = [8, 8], strides = [1, 1]} : vector<8x96xf32> to vector<8x8xf32>
    %cst_48 = arith.constant dense<0.000000e+00> : vector<8x8xf32>
    %81 = tpu.matmul %78, %79, %cst_48 {dimension_numbers = #tpu.dot_dimension_numbers<[1], [1], [0], [0], [0, 0, 1, 0], [], []>} : vector<8x8xf32>, vector<8x8xf32>, vector<8x8xf32> -> vector<8x8xf32>
    %82 = arith.addf %81, %13 : vector<8x8xf32>
    %cst_49 = arith.constant dense<0xFF800000> : vector<8xf32>
    %83 = vector.multi_reduction <maximumf>, %82, %cst_49 [1] : vector<8x8xf32> to vector<8xf32>
    %84 = vector.shape_cast %83 : vector<8xf32> to vector<8x1xf32>
    %85 = vector.broadcast %84 : vector<8x1xf32> to vector<8x8xf32>
    %86 = arith.subf %82, %85 : vector<8x8xf32>
    %87 = math.exp %86 : vector<8x8xf32>
    %cst_50 = arith.constant dense<0.000000e+00> : vector<8xf32>
    %88 = vector.multi_reduction <add>, %87, %cst_50 [1] : vector<8x8xf32> to vector<8xf32>
    %89 = vector.shape_cast %88 : vector<8xf32> to vector<8x1xf32>
    %90 = tpu.reciprocal %89 {approx = true} : vector<8x1xf32> -> vector<8x1xf32>
    %91 = vector.broadcast %90 : vector<8x1xf32> to vector<8x8xf32>
    %92 = arith.mulf %87, %91 : vector<8x8xf32>
    %cst_51 = arith.constant dense<0.000000e+00> : vector<8x8xf32>
    %93 = tpu.matmul %92, %80, %cst_51 {dimension_numbers = #tpu.dot_dimension_numbers<[1], [0], [0], [1], [0, 0, 1, 1], [], []>} : vector<8x8xf32>, vector<8x8xf32>, vector<8x8xf32> -> vector<8x8xf32>
    %94 = vector.extract_strided_slice %19 {offsets = [16, 0], sizes = [8, 32], strides = [1, 1]} : vector<32x32xf32> to vector<8x32xf32>
    %cst_52 = arith.constant dense<0.000000e+00> : vector<8x32xf32>
    %95 = tpu.matmul %93, %94, %cst_52 {dimension_numbers = #tpu.dot_dimension_numbers<[1], [0], [0], [1], [0, 0, 1, 1], [], []>} : vector<8x8xf32>, vector<8x32xf32>, vector<8x32xf32> -> vector<8x32xf32>
    %96 = arith.addf %75, %95 : vector<8x32xf32>
    %97 = vector.extract_strided_slice %32 {offsets = [0, 24], sizes = [8, 8], strides = [1, 1]} : vector<8x96xf32> to vector<8x8xf32>
    %cst_53 = arith.constant 0.353553385 : f32
    %98 = vector.broadcast %cst_53 : f32 to vector<8x8xf32>
    %99 = arith.mulf %97, %98 : vector<8x8xf32>
    %100 = vector.extract_strided_slice %32 {offsets = [0, 56], sizes = [8, 8], strides = [1, 1]} : vector<8x96xf32> to vector<8x8xf32>
    %101 = vector.extract_strided_slice %32 {offsets = [0, 88], sizes = [8, 8], strides = [1, 1]} : vector<8x96xf32> to vector<8x8xf32>
    %cst_54 = arith.constant dense<0.000000e+00> : vector<8x8xf32>
    %102 = tpu.matmul %99, %100, %cst_54 {dimension_numbers = #tpu.dot_dimension_numbers<[1], [1], [0], [0], [0, 0, 1, 0], [], []>} : vector<8x8xf32>, vector<8x8xf32>, vector<8x8xf32> -> vector<8x8xf32>
    %103 = arith.addf %102, %13 : vector<8x8xf32>
    %cst_55 = arith.constant dense<0xFF800000> : vector<8xf32>
    %104 = vector.multi_reduction <maximumf>, %103, %cst_55 [1] : vector<8x8xf32> to vector<8xf32>
    %105 = vector.shape_cast %104 : vector<8xf32> to vector<8x1xf32>
    %106 = vector.broadcast %105 : vector<8x1xf32> to vector<8x8xf32>
    %107 = arith.subf %103, %106 : vector<8x8xf32>
    %108 = math.exp %107 : vector<8x8xf32>
    %cst_56 = arith.constant dense<0.000000e+00> : vector<8xf32>
    %109 = vector.multi_reduction <add>, %108, %cst_56 [1] : vector<8x8xf32> to vector<8xf32>
    %110 = vector.shape_cast %109 : vector<8xf32> to vector<8x1xf32>
    %111 = tpu.reciprocal %110 {approx = true} : vector<8x1xf32> -> vector<8x1xf32>
    %112 = vector.broadcast %111 : vector<8x1xf32> to vector<8x8xf32>
    %113 = arith.mulf %108, %112 : vector<8x8xf32>
    %cst_57 = arith.constant dense<0.000000e+00> : vector<8x8xf32>
    %114 = tpu.matmul %113, %101, %cst_57 {dimension_numbers = #tpu.dot_dimension_numbers<[1], [0], [0], [1], [0, 0, 1, 1], [], []>} : vector<8x8xf32>, vector<8x8xf32>, vector<8x8xf32> -> vector<8x8xf32>
    %115 = vector.extract_strided_slice %19 {offsets = [24, 0], sizes = [8, 32], strides = [1, 1]} : vector<32x32xf32> to vector<8x32xf32>
    %cst_58 = arith.constant dense<0.000000e+00> : vector<8x32xf32>
    %116 = tpu.matmul %114, %115, %cst_58 {dimension_numbers = #tpu.dot_dimension_numbers<[1], [0], [0], [1], [0, 0, 1, 1], [], []>} : vector<8x8xf32>, vector<8x32xf32>, vector<8x32xf32> -> vector<8x32xf32>
    %117 = arith.addf %96, %116 : vector<8x32xf32>
    %118 = vector.broadcast %21 : vector<1x32xf32> to vector<8x32xf32>
    %119 = arith.addf %117, %118 : vector<8x32xf32>
    %120 = arith.addf %12, %119 : vector<8x32xf32>
    %c0_59 = arith.constant 0 : index
    %c0_60 = arith.constant 0 : index
    %c0_61 = arith.constant 0 : index
    %121 = vector.load %arg13[%c0_59, %c0_60, %c0_61] : memref<2x1x32xf32, #tpu.memory_space<vmem>>, vector<1x1x32xf32>
    %122 = vector.shape_cast %121 : vector<1x1x32xf32> to vector<1x32xf32>
    %c0_62 = arith.constant 0 : index
    %c0_63 = arith.constant 0 : index
    %c0_64 = arith.constant 0 : index
    %123 = vector.load %arg14[%c0_62, %c0_63, %c0_64] : memref<2x1x32xf32, #tpu.memory_space<vmem>>, vector<1x1x32xf32>
    %124 = vector.shape_cast %123 : vector<1x1x32xf32> to vector<1x32xf32>
    %cst_65 = arith.constant dense<0.000000e+00> : vector<8xf32>
    %125 = vector.multi_reduction <add>, %120, %cst_65 [1] : vector<8x32xf32> to vector<8xf32>
    %126 = vector.shape_cast %125 : vector<8xf32> to vector<8x1xf32>
    %cst_66 = arith.constant 3.200000e+01 : f32
    %127 = vector.broadcast %cst_66 : f32 to vector<8x1xf32>
    %128 = arith.divf %126, %127 : vector<8x1xf32>
    %129 = vector.broadcast %128 : vector<8x1xf32> to vector<8x32xf32>
    %130 = arith.subf %120, %129 : vector<8x32xf32>
    %131 = arith.mulf %130, %130 : vector<8x32xf32>
    %cst_67 = arith.constant dense<0.000000e+00> : vector<8xf32>
    %132 = vector.multi_reduction <add>, %131, %cst_67 [1] : vector<8x32xf32> to vector<8xf32>
    %133 = vector.shape_cast %132 : vector<8xf32> to vector<8x1xf32>
    %cst_68 = arith.constant 3.200000e+01 : f32
    %134 = vector.broadcast %cst_68 : f32 to vector<8x1xf32>
    %135 = arith.divf %133, %134 : vector<8x1xf32>
    %136 = vector.broadcast %128 : vector<8x1xf32> to vector<8x32xf32>
    %137 = arith.subf %120, %136 : vector<8x32xf32>
    %cst_69 = arith.constant 9.99999974E-6 : f32
    %138 = vector.broadcast %cst_69 : f32 to vector<8x1xf32>
    %139 = arith.addf %135, %138 : vector<8x1xf32>
    %140 = math.rsqrt %139 : vector<8x1xf32>
    %141 = vector.broadcast %140 : vector<8x1xf32> to vector<8x32xf32>
    %142 = arith.mulf %137, %141 : vector<8x32xf32>
    %143 = vector.broadcast %122 : vector<1x32xf32> to vector<8x32xf32>
    %144 = arith.mulf %142, %143 : vector<8x32xf32>
    %145 = vector.broadcast %124 : vector<1x32xf32> to vector<8x32xf32>
    %146 = arith.addf %144, %145 : vector<8x32xf32>
    %cst_70 = arith.constant dense<0.000000e+00> : vector<8x64xf32>
    %147 = tpu.matmul %146, %23, %cst_70 {dimension_numbers = #tpu.dot_dimension_numbers<[1], [0], [0], [1], [0, 0, 1, 1], [], []>} : vector<8x32xf32>, vector<32x64xf32>, vector<8x64xf32> -> vector<8x64xf32>
    %148 = vector.broadcast %25 : vector<1x64xf32> to vector<8x64xf32>
    %149 = arith.addf %147, %148 : vector<8x64xf32>
    %cst_71 = arith.constant 0.000000e+00 : f32
    %150 = vector.broadcast %cst_71 : f32 to vector<8x64xf32>
    %151 = arith.maximumf %149, %150 : vector<8x64xf32>
    %cst_72 = arith.constant dense<0.000000e+00> : vector<8x32xf32>
    %152 = tpu.matmul %151, %27, %cst_72 {dimension_numbers = #tpu.dot_dimension_numbers<[1], [0], [0], [1], [0, 0, 1, 1], [], []>} : vector<8x64xf32>, vector<64x32xf32>, vector<8x32xf32> -> vector<8x32xf32>
    %153 = vector.broadcast %29 : vector<1x32xf32> to vector<8x32xf32>
    %154 = arith.addf %152, %153 : vector<8x32xf32>
    %155 = arith.addf %146, %154 : vector<8x32xf32>
    %c0_73 = arith.constant 0 : index
    %c0_74 = arith.constant 0 : index
    %c0_75 = arith.constant 0 : index
    %156 = vector.load %arg15[%c0_73, %c0_74, %c0_75] : memref<2x1x32xf32, #tpu.memory_space<vmem>>, vector<1x1x32xf32>
    %157 = vector.shape_cast %156 : vector<1x1x32xf32> to vector<1x32xf32>
    %c0_76 = arith.constant 0 : index
    %c0_77 = arith.constant 0 : index
    %c0_78 = arith.constant 0 : index
    %158 = vector.load %arg16[%c0_76, %c0_77, %c0_78] : memref<2x1x32xf32, #tpu.memory_space<vmem>>, vector<1x1x32xf32>
    %159 = vector.shape_cast %158 : vector<1x1x32xf32> to vector<1x32xf32>
    %cst_79 = arith.constant dense<0.000000e+00> : vector<8xf32>
    %160 = vector.multi_reduction <add>, %155, %cst_79 [1] : vector<8x32xf32> to vector<8xf32>
    %161 = vector.shape_cast %160 : vector<8xf32> to vector<8x1xf32>
    %cst_80 = arith.constant 3.200000e+01 : f32
    %162 = vector.broadcast %cst_80 : f32 to vector<8x1xf32>
    %163 = arith.divf %161, %162 : vector<8x1xf32>
    %164 = vector.broadcast %163 : vector<8x1xf32> to vector<8x32xf32>
    %165 = arith.subf %155, %164 : vector<8x32xf32>
    %166 = arith.mulf %165, %165 : vector<8x32xf32>
    %cst_81 = arith.constant dense<0.000000e+00> : vector<8xf32>
    %167 = vector.multi_reduction <add>, %166, %cst_81 [1] : vector<8x32xf32> to vector<8xf32>
    %168 = vector.shape_cast %167 : vector<8xf32> to vector<8x1xf32>
    %cst_82 = arith.constant 3.200000e+01 : f32
    %169 = vector.broadcast %cst_82 : f32 to vector<8x1xf32>
    %170 = arith.divf %168, %169 : vector<8x1xf32>
    %171 = vector.broadcast %163 : vector<8x1xf32> to vector<8x32xf32>
    %172 = arith.subf %155, %171 : vector<8x32xf32>
    %cst_83 = arith.constant 9.99999974E-6 : f32
    %173 = vector.broadcast %cst_83 : f32 to vector<8x1xf32>
    %174 = arith.addf %170, %173 : vector<8x1xf32>
    %175 = math.rsqrt %174 : vector<8x1xf32>
    %176 = vector.broadcast %175 : vector<8x1xf32> to vector<8x32xf32>
    %177 = arith.mulf %172, %176 : vector<8x32xf32>
    %178 = vector.broadcast %157 : vector<1x32xf32> to vector<8x32xf32>
    %179 = arith.mulf %177, %178 : vector<8x32xf32>
    %180 = vector.broadcast %159 : vector<1x32xf32> to vector<8x32xf32>
    %181 = arith.addf %179, %180 : vector<8x32xf32>
    %c1 = arith.constant 1 : index
    %c0_84 = arith.constant 0 : index
    %c0_85 = arith.constant 0 : index
    %182 = vector.load %arg5[%c1, %c0_84, %c0_85] : memref<2x32x96xf32, #tpu.memory_space<vmem>>, vector<1x32x96xf32>
    %183 = vector.shape_cast %182 : vector<1x32x96xf32> to vector<32x96xf32>
    %c1_86 = arith.constant 1 : index
    %c0_87 = arith.constant 0 : index
    %c0_88 = arith.constant 0 : index
    %184 = vector.load %arg6[%c1_86, %c0_87, %c0_88] : memref<2x1x96xf32, #tpu.memory_space<vmem>>, vector<1x1x96xf32>
    %185 = vector.shape_cast %184 : vector<1x1x96xf32> to vector<1x96xf32>
    %c1_89 = arith.constant 1 : index
    %c0_90 = arith.constant 0 : index
    %c0_91 = arith.constant 0 : index
    %186 = vector.load %arg7[%c1_89, %c0_90, %c0_91] : memref<2x32x32xf32, #tpu.memory_space<vmem>>, vector<1x32x32xf32>
    %187 = vector.shape_cast %186 : vector<1x32x32xf32> to vector<32x32xf32>
    %c1_92 = arith.constant 1 : index
    %c0_93 = arith.constant 0 : index
    %c0_94 = arith.constant 0 : index
    %188 = vector.load %arg8[%c1_92, %c0_93, %c0_94] : memref<2x1x32xf32, #tpu.memory_space<vmem>>, vector<1x1x32xf32>
    %189 = vector.shape_cast %188 : vector<1x1x32xf32> to vector<1x32xf32>
    %c1_95 = arith.constant 1 : index
    %c0_96 = arith.constant 0 : index
    %c0_97 = arith.constant 0 : index
    %190 = vector.load %arg9[%c1_95, %c0_96, %c0_97] : memref<2x32x64xf32, #tpu.memory_space<vmem>>, vector<1x32x64xf32>
    %191 = vector.shape_cast %190 : vector<1x32x64xf32> to vector<32x64xf32>
    %c1_98 = arith.constant 1 : index
    %c0_99 = arith.constant 0 : index
    %c0_100 = arith.constant 0 : index
    %192 = vector.load %arg10[%c1_98, %c0_99, %c0_100] : memref<2x1x64xf32, #tpu.memory_space<vmem>>, vector<1x1x64xf32>
    %193 = vector.shape_cast %192 : vector<1x1x64xf32> to vector<1x64xf32>
    %c1_101 = arith.constant 1 : index
    %c0_102 = arith.constant 0 : index
    %c0_103 = arith.constant 0 : index
    %194 = vector.load %arg11[%c1_101, %c0_102, %c0_103] : memref<2x64x32xf32, #tpu.memory_space<vmem>>, vector<1x64x32xf32>
    %195 = vector.shape_cast %194 : vector<1x64x32xf32> to vector<64x32xf32>
    %c1_104 = arith.constant 1 : index
    %c0_105 = arith.constant 0 : index
    %c0_106 = arith.constant 0 : index
    %196 = vector.load %arg12[%c1_104, %c0_105, %c0_106] : memref<2x1x32xf32, #tpu.memory_space<vmem>>, vector<1x1x32xf32>
    %197 = vector.shape_cast %196 : vector<1x1x32xf32> to vector<1x32xf32>
    %cst_107 = arith.constant dense<0.000000e+00> : vector<8x96xf32>
    %198 = tpu.matmul %181, %183, %cst_107 {dimension_numbers = #tpu.dot_dimension_numbers<[1], [0], [0], [1], [0, 0, 1, 1], [], []>} : vector<8x32xf32>, vector<32x96xf32>, vector<8x96xf32> -> vector<8x96xf32>
    %199 = vector.broadcast %185 : vector<1x96xf32> to vector<8x96xf32>
    %200 = arith.addf %198, %199 : vector<8x96xf32>
    %cst_108 = arith.constant 0.000000e+00 : f32
    %201 = vector.broadcast %cst_108 : f32 to vector<8x32xf32>
    %202 = vector.extract_strided_slice %200 {offsets = [0, 0], sizes = [8, 8], strides = [1, 1]} : vector<8x96xf32> to vector<8x8xf32>
    %cst_109 = arith.constant 0.353553385 : f32
    %203 = vector.broadcast %cst_109 : f32 to vector<8x8xf32>
    %204 = arith.mulf %202, %203 : vector<8x8xf32>
    %205 = vector.extract_strided_slice %200 {offsets = [0, 32], sizes = [8, 8], strides = [1, 1]} : vector<8x96xf32> to vector<8x8xf32>
    %206 = vector.extract_strided_slice %200 {offsets = [0, 64], sizes = [8, 8], strides = [1, 1]} : vector<8x96xf32> to vector<8x8xf32>
    %cst_110 = arith.constant dense<0.000000e+00> : vector<8x8xf32>
    %207 = tpu.matmul %204, %205, %cst_110 {dimension_numbers = #tpu.dot_dimension_numbers<[1], [1], [0], [0], [0, 0, 1, 0], [], []>} : vector<8x8xf32>, vector<8x8xf32>, vector<8x8xf32> -> vector<8x8xf32>
    %208 = arith.addf %207, %13 : vector<8x8xf32>
    %cst_111 = arith.constant dense<0xFF800000> : vector<8xf32>
    %209 = vector.multi_reduction <maximumf>, %208, %cst_111 [1] : vector<8x8xf32> to vector<8xf32>
    %210 = vector.shape_cast %209 : vector<8xf32> to vector<8x1xf32>
    %211 = vector.broadcast %210 : vector<8x1xf32> to vector<8x8xf32>
    %212 = arith.subf %208, %211 : vector<8x8xf32>
    %213 = math.exp %212 : vector<8x8xf32>
    %cst_112 = arith.constant dense<0.000000e+00> : vector<8xf32>
    %214 = vector.multi_reduction <add>, %213, %cst_112 [1] : vector<8x8xf32> to vector<8xf32>
    %215 = vector.shape_cast %214 : vector<8xf32> to vector<8x1xf32>
    %216 = tpu.reciprocal %215 {approx = true} : vector<8x1xf32> -> vector<8x1xf32>
    %217 = vector.broadcast %216 : vector<8x1xf32> to vector<8x8xf32>
    %218 = arith.mulf %213, %217 : vector<8x8xf32>
    %cst_113 = arith.constant dense<0.000000e+00> : vector<8x8xf32>
    %219 = tpu.matmul %218, %206, %cst_113 {dimension_numbers = #tpu.dot_dimension_numbers<[1], [0], [0], [1], [0, 0, 1, 1], [], []>} : vector<8x8xf32>, vector<8x8xf32>, vector<8x8xf32> -> vector<8x8xf32>
    %220 = vector.extract_strided_slice %187 {offsets = [0, 0], sizes = [8, 32], strides = [1, 1]} : vector<32x32xf32> to vector<8x32xf32>
    %cst_114 = arith.constant dense<0.000000e+00> : vector<8x32xf32>
    %221 = tpu.matmul %219, %220, %cst_114 {dimension_numbers = #tpu.dot_dimension_numbers<[1], [0], [0], [1], [0, 0, 1, 1], [], []>} : vector<8x8xf32>, vector<8x32xf32>, vector<8x32xf32> -> vector<8x32xf32>
    %222 = arith.addf %201, %221 : vector<8x32xf32>
    %223 = vector.extract_strided_slice %200 {offsets = [0, 8], sizes = [8, 8], strides = [1, 1]} : vector<8x96xf32> to vector<8x8xf32>
    %cst_115 = arith.constant 0.353553385 : f32
    %224 = vector.broadcast %cst_115 : f32 to vector<8x8xf32>
    %225 = arith.mulf %223, %224 : vector<8x8xf32>
    %226 = vector.extract_strided_slice %200 {offsets = [0, 40], sizes = [8, 8], strides = [1, 1]} : vector<8x96xf32> to vector<8x8xf32>
    %227 = vector.extract_strided_slice %200 {offsets = [0, 72], sizes = [8, 8], strides = [1, 1]} : vector<8x96xf32> to vector<8x8xf32>
    %cst_116 = arith.constant dense<0.000000e+00> : vector<8x8xf32>
    %228 = tpu.matmul %225, %226, %cst_116 {dimension_numbers = #tpu.dot_dimension_numbers<[1], [1], [0], [0], [0, 0, 1, 0], [], []>} : vector<8x8xf32>, vector<8x8xf32>, vector<8x8xf32> -> vector<8x8xf32>
    %229 = arith.addf %228, %13 : vector<8x8xf32>
    %cst_117 = arith.constant dense<0xFF800000> : vector<8xf32>
    %230 = vector.multi_reduction <maximumf>, %229, %cst_117 [1] : vector<8x8xf32> to vector<8xf32>
    %231 = vector.shape_cast %230 : vector<8xf32> to vector<8x1xf32>
    %232 = vector.broadcast %231 : vector<8x1xf32> to vector<8x8xf32>
    %233 = arith.subf %229, %232 : vector<8x8xf32>
    %234 = math.exp %233 : vector<8x8xf32>
    %cst_118 = arith.constant dense<0.000000e+00> : vector<8xf32>
    %235 = vector.multi_reduction <add>, %234, %cst_118 [1] : vector<8x8xf32> to vector<8xf32>
    %236 = vector.shape_cast %235 : vector<8xf32> to vector<8x1xf32>
    %237 = tpu.reciprocal %236 {approx = true} : vector<8x1xf32> -> vector<8x1xf32>
    %238 = vector.broadcast %237 : vector<8x1xf32> to vector<8x8xf32>
    %239 = arith.mulf %234, %238 : vector<8x8xf32>
    %cst_119 = arith.constant dense<0.000000e+00> : vector<8x8xf32>
    %240 = tpu.matmul %239, %227, %cst_119 {dimension_numbers = #tpu.dot_dimension_numbers<[1], [0], [0], [1], [0, 0, 1, 1], [], []>} : vector<8x8xf32>, vector<8x8xf32>, vector<8x8xf32> -> vector<8x8xf32>
    %241 = vector.extract_strided_slice %187 {offsets = [8, 0], sizes = [8, 32], strides = [1, 1]} : vector<32x32xf32> to vector<8x32xf32>
    %cst_120 = arith.constant dense<0.000000e+00> : vector<8x32xf32>
    %242 = tpu.matmul %240, %241, %cst_120 {dimension_numbers = #tpu.dot_dimension_numbers<[1], [0], [0], [1], [0, 0, 1, 1], [], []>} : vector<8x8xf32>, vector<8x32xf32>, vector<8x32xf32> -> vector<8x32xf32>
    %243 = arith.addf %222, %242 : vector<8x32xf32>
    %244 = vector.extract_strided_slice %200 {offsets = [0, 16], sizes = [8, 8], strides = [1, 1]} : vector<8x96xf32> to vector<8x8xf32>
    %cst_121 = arith.constant 0.353553385 : f32
    %245 = vector.broadcast %cst_121 : f32 to vector<8x8xf32>
    %246 = arith.mulf %244, %245 : vector<8x8xf32>
    %247 = vector.extract_strided_slice %200 {offsets = [0, 48], sizes = [8, 8], strides = [1, 1]} : vector<8x96xf32> to vector<8x8xf32>
    %248 = vector.extract_strided_slice %200 {offsets = [0, 80], sizes = [8, 8], strides = [1, 1]} : vector<8x96xf32> to vector<8x8xf32>
    %cst_122 = arith.constant dense<0.000000e+00> : vector<8x8xf32>
    %249 = tpu.matmul %246, %247, %cst_122 {dimension_numbers = #tpu.dot_dimension_numbers<[1], [1], [0], [0], [0, 0, 1, 0], [], []>} : vector<8x8xf32>, vector<8x8xf32>, vector<8x8xf32> -> vector<8x8xf32>
    %250 = arith.addf %249, %13 : vector<8x8xf32>
    %cst_123 = arith.constant dense<0xFF800000> : vector<8xf32>
    %251 = vector.multi_reduction <maximumf>, %250, %cst_123 [1] : vector<8x8xf32> to vector<8xf32>
    %252 = vector.shape_cast %251 : vector<8xf32> to vector<8x1xf32>
    %253 = vector.broadcast %252 : vector<8x1xf32> to vector<8x8xf32>
    %254 = arith.subf %250, %253 : vector<8x8xf32>
    %255 = math.exp %254 : vector<8x8xf32>
    %cst_124 = arith.constant dense<0.000000e+00> : vector<8xf32>
    %256 = vector.multi_reduction <add>, %255, %cst_124 [1] : vector<8x8xf32> to vector<8xf32>
    %257 = vector.shape_cast %256 : vector<8xf32> to vector<8x1xf32>
    %258 = tpu.reciprocal %257 {approx = true} : vector<8x1xf32> -> vector<8x1xf32>
    %259 = vector.broadcast %258 : vector<8x1xf32> to vector<8x8xf32>
    %260 = arith.mulf %255, %259 : vector<8x8xf32>
    %cst_125 = arith.constant dense<0.000000e+00> : vector<8x8xf32>
    %261 = tpu.matmul %260, %248, %cst_125 {dimension_numbers = #tpu.dot_dimension_numbers<[1], [0], [0], [1], [0, 0, 1, 1], [], []>} : vector<8x8xf32>, vector<8x8xf32>, vector<8x8xf32> -> vector<8x8xf32>
    %262 = vector.extract_strided_slice %187 {offsets = [16, 0], sizes = [8, 32], strides = [1, 1]} : vector<32x32xf32> to vector<8x32xf32>
    %cst_126 = arith.constant dense<0.000000e+00> : vector<8x32xf32>
    %263 = tpu.matmul %261, %262, %cst_126 {dimension_numbers = #tpu.dot_dimension_numbers<[1], [0], [0], [1], [0, 0, 1, 1], [], []>} : vector<8x8xf32>, vector<8x32xf32>, vector<8x32xf32> -> vector<8x32xf32>
    %264 = arith.addf %243, %263 : vector<8x32xf32>
    %265 = vector.extract_strided_slice %200 {offsets = [0, 24], sizes = [8, 8], strides = [1, 1]} : vector<8x96xf32> to vector<8x8xf32>
    %cst_127 = arith.constant 0.353553385 : f32
    %266 = vector.broadcast %cst_127 : f32 to vector<8x8xf32>
    %267 = arith.mulf %265, %266 : vector<8x8xf32>
    %268 = vector.extract_strided_slice %200 {offsets = [0, 56], sizes = [8, 8], strides = [1, 1]} : vector<8x96xf32> to vector<8x8xf32>
    %269 = vector.extract_strided_slice %200 {offsets = [0, 88], sizes = [8, 8], strides = [1, 1]} : vector<8x96xf32> to vector<8x8xf32>
    %cst_128 = arith.constant dense<0.000000e+00> : vector<8x8xf32>
    %270 = tpu.matmul %267, %268, %cst_128 {dimension_numbers = #tpu.dot_dimension_numbers<[1], [1], [0], [0], [0, 0, 1, 0], [], []>} : vector<8x8xf32>, vector<8x8xf32>, vector<8x8xf32> -> vector<8x8xf32>
    %271 = arith.addf %270, %13 : vector<8x8xf32>
    %cst_129 = arith.constant dense<0xFF800000> : vector<8xf32>
    %272 = vector.multi_reduction <maximumf>, %271, %cst_129 [1] : vector<8x8xf32> to vector<8xf32>
    %273 = vector.shape_cast %272 : vector<8xf32> to vector<8x1xf32>
    %274 = vector.broadcast %273 : vector<8x1xf32> to vector<8x8xf32>
    %275 = arith.subf %271, %274 : vector<8x8xf32>
    %276 = math.exp %275 : vector<8x8xf32>
    %cst_130 = arith.constant dense<0.000000e+00> : vector<8xf32>
    %277 = vector.multi_reduction <add>, %276, %cst_130 [1] : vector<8x8xf32> to vector<8xf32>
    %278 = vector.shape_cast %277 : vector<8xf32> to vector<8x1xf32>
    %279 = tpu.reciprocal %278 {approx = true} : vector<8x1xf32> -> vector<8x1xf32>
    %280 = vector.broadcast %279 : vector<8x1xf32> to vector<8x8xf32>
    %281 = arith.mulf %276, %280 : vector<8x8xf32>
    %cst_131 = arith.constant dense<0.000000e+00> : vector<8x8xf32>
    %282 = tpu.matmul %281, %269, %cst_131 {dimension_numbers = #tpu.dot_dimension_numbers<[1], [0], [0], [1], [0, 0, 1, 1], [], []>} : vector<8x8xf32>, vector<8x8xf32>, vector<8x8xf32> -> vector<8x8xf32>
    %283 = vector.extract_strided_slice %187 {offsets = [24, 0], sizes = [8, 32], strides = [1, 1]} : vector<32x32xf32> to vector<8x32xf32>
    %cst_132 = arith.constant dense<0.000000e+00> : vector<8x32xf32>
    %284 = tpu.matmul %282, %283, %cst_132 {dimension_numbers = #tpu.dot_dimension_numbers<[1], [0], [0], [1], [0, 0, 1, 1], [], []>} : vector<8x8xf32>, vector<8x32xf32>, vector<8x32xf32> -> vector<8x32xf32>
    %285 = arith.addf %264, %284 : vector<8x32xf32>
    %286 = vector.broadcast %189 : vector<1x32xf32> to vector<8x32xf32>
    %287 = arith.addf %285, %286 : vector<8x32xf32>
    %288 = arith.addf %181, %287 : vector<8x32xf32>
    %c1_133 = arith.constant 1 : index
    %c0_134 = arith.constant 0 : index
    %c0_135 = arith.constant 0 : index
    %289 = vector.load %arg13[%c1_133, %c0_134, %c0_135] : memref<2x1x32xf32, #tpu.memory_space<vmem>>, vector<1x1x32xf32>
    %290 = vector.shape_cast %289 : vector<1x1x32xf32> to vector<1x32xf32>
    %c1_136 = arith.constant 1 : index
    %c0_137 = arith.constant 0 : index
    %c0_138 = arith.constant 0 : index
    %291 = vector.load %arg14[%c1_136, %c0_137, %c0_138] : memref<2x1x32xf32, #tpu.memory_space<vmem>>, vector<1x1x32xf32>
    %292 = vector.shape_cast %291 : vector<1x1x32xf32> to vector<1x32xf32>
    %cst_139 = arith.constant dense<0.000000e+00> : vector<8xf32>
    %293 = vector.multi_reduction <add>, %288, %cst_139 [1] : vector<8x32xf32> to vector<8xf32>
    %294 = vector.shape_cast %293 : vector<8xf32> to vector<8x1xf32>
    %cst_140 = arith.constant 3.200000e+01 : f32
    %295 = vector.broadcast %cst_140 : f32 to vector<8x1xf32>
    %296 = arith.divf %294, %295 : vector<8x1xf32>
    %297 = vector.broadcast %296 : vector<8x1xf32> to vector<8x32xf32>
    %298 = arith.subf %288, %297 : vector<8x32xf32>
    %299 = arith.mulf %298, %298 : vector<8x32xf32>
    %cst_141 = arith.constant dense<0.000000e+00> : vector<8xf32>
    %300 = vector.multi_reduction <add>, %299, %cst_141 [1] : vector<8x32xf32> to vector<8xf32>
    %301 = vector.shape_cast %300 : vector<8xf32> to vector<8x1xf32>
    %cst_142 = arith.constant 3.200000e+01 : f32
    %302 = vector.broadcast %cst_142 : f32 to vector<8x1xf32>
    %303 = arith.divf %301, %302 : vector<8x1xf32>
    %304 = vector.broadcast %296 : vector<8x1xf32> to vector<8x32xf32>
    %305 = arith.subf %288, %304 : vector<8x32xf32>
    %cst_143 = arith.constant 9.99999974E-6 : f32
    %306 = vector.broadcast %cst_143 : f32 to vector<8x1xf32>
    %307 = arith.addf %303, %306 : vector<8x1xf32>
    %308 = math.rsqrt %307 : vector<8x1xf32>
    %309 = vector.broadcast %308 : vector<8x1xf32> to vector<8x32xf32>
    %310 = arith.mulf %305, %309 : vector<8x32xf32>
    %311 = vector.broadcast %290 : vector<1x32xf32> to vector<8x32xf32>
    %312 = arith.mulf %310, %311 : vector<8x32xf32>
    %313 = vector.broadcast %292 : vector<1x32xf32> to vector<8x32xf32>
    %314 = arith.addf %312, %313 : vector<8x32xf32>
    %cst_144 = arith.constant dense<0.000000e+00> : vector<8x64xf32>
    %315 = tpu.matmul %314, %191, %cst_144 {dimension_numbers = #tpu.dot_dimension_numbers<[1], [0], [0], [1], [0, 0, 1, 1], [], []>} : vector<8x32xf32>, vector<32x64xf32>, vector<8x64xf32> -> vector<8x64xf32>
    %316 = vector.broadcast %193 : vector<1x64xf32> to vector<8x64xf32>
    %317 = arith.addf %315, %316 : vector<8x64xf32>
    %cst_145 = arith.constant 0.000000e+00 : f32
    %318 = vector.broadcast %cst_145 : f32 to vector<8x64xf32>
    %319 = arith.maximumf %317, %318 : vector<8x64xf32>
    %cst_146 = arith.constant dense<0.000000e+00> : vector<8x32xf32>
    %320 = tpu.matmul %319, %195, %cst_146 {dimension_numbers = #tpu.dot_dimension_numbers<[1], [0], [0], [1], [0, 0, 1, 1], [], []>} : vector<8x64xf32>, vector<64x32xf32>, vector<8x32xf32> -> vector<8x32xf32>
    %321 = vector.broadcast %197 : vector<1x32xf32> to vector<8x32xf32>
    %322 = arith.addf %320, %321 : vector<8x32xf32>
    %323 = arith.addf %314, %322 : vector<8x32xf32>
    %c1_147 = arith.constant 1 : index
    %c0_148 = arith.constant 0 : index
    %c0_149 = arith.constant 0 : index
    %324 = vector.load %arg15[%c1_147, %c0_148, %c0_149] : memref<2x1x32xf32, #tpu.memory_space<vmem>>, vector<1x1x32xf32>
    %325 = vector.shape_cast %324 : vector<1x1x32xf32> to vector<1x32xf32>
    %c1_150 = arith.constant 1 : index
    %c0_151 = arith.constant 0 : index
    %c0_152 = arith.constant 0 : index
    %326 = vector.load %arg16[%c1_150, %c0_151, %c0_152] : memref<2x1x32xf32, #tpu.memory_space<vmem>>, vector<1x1x32xf32>
    %327 = vector.shape_cast %326 : vector<1x1x32xf32> to vector<1x32xf32>
    %cst_153 = arith.constant dense<0.000000e+00> : vector<8xf32>
    %328 = vector.multi_reduction <add>, %323, %cst_153 [1] : vector<8x32xf32> to vector<8xf32>
    %329 = vector.shape_cast %328 : vector<8xf32> to vector<8x1xf32>
    %cst_154 = arith.constant 3.200000e+01 : f32
    %330 = vector.broadcast %cst_154 : f32 to vector<8x1xf32>
    %331 = arith.divf %329, %330 : vector<8x1xf32>
    %332 = vector.broadcast %331 : vector<8x1xf32> to vector<8x32xf32>
    %333 = arith.subf %323, %332 : vector<8x32xf32>
    %334 = arith.mulf %333, %333 : vector<8x32xf32>
    %cst_155 = arith.constant dense<0.000000e+00> : vector<8xf32>
    %335 = vector.multi_reduction <add>, %334, %cst_155 [1] : vector<8x32xf32> to vector<8xf32>
    %336 = vector.shape_cast %335 : vector<8xf32> to vector<8x1xf32>
    %cst_156 = arith.constant 3.200000e+01 : f32
    %337 = vector.broadcast %cst_156 : f32 to vector<8x1xf32>
    %338 = arith.divf %336, %337 : vector<8x1xf32>
    %339 = vector.broadcast %331 : vector<8x1xf32> to vector<8x32xf32>
    %340 = arith.subf %323, %339 : vector<8x32xf32>
    %cst_157 = arith.constant 9.99999974E-6 : f32
    %341 = vector.broadcast %cst_157 : f32 to vector<8x1xf32>
    %342 = arith.addf %338, %341 : vector<8x1xf32>
    %343 = math.rsqrt %342 : vector<8x1xf32>
    %344 = vector.broadcast %343 : vector<8x1xf32> to vector<8x32xf32>
    %345 = arith.mulf %340, %344 : vector<8x32xf32>
    %346 = vector.broadcast %325 : vector<1x32xf32> to vector<8x32xf32>
    %347 = arith.mulf %345, %346 : vector<8x32xf32>
    %348 = vector.broadcast %327 : vector<1x32xf32> to vector<8x32xf32>
    %349 = arith.addf %347, %348 : vector<8x32xf32>
    %c0_158 = arith.constant 0 : index
    %c0_159 = arith.constant 0 : index
    %350 = vector.load %arg17[%c0_158, %c0_159] : memref<32x128xf32, #tpu.memory_space<vmem>>, vector<32x128xf32>
    %cst_160 = arith.constant dense<0.000000e+00> : vector<8x128xf32>
    %351 = tpu.matmul %349, %350, %cst_160 {dimension_numbers = #tpu.dot_dimension_numbers<[1], [0], [0], [1], [0, 0, 1, 1], [], []>} : vector<8x32xf32>, vector<32x128xf32>, vector<8x128xf32> -> vector<8x128xf32>
    %c0_161 = arith.constant 0 : index
    %c0_162 = arith.constant 0 : index
    %352 = vector.load %arg18[%c0_161, %c0_162] : memref<1x128xf32, #tpu.memory_space<vmem>>, vector<1x128xf32>
    %353 = vector.broadcast %352 : vector<1x128xf32> to vector<8x128xf32>
    %354 = arith.addf %351, %353 : vector<8x128xf32>
    %c0_163 = arith.constant 0 : index
    %c0_164 = arith.constant 0 : index
    %c0_165 = arith.constant 0 : index
    %355 = vector.load %arg19[%c0_163, %c0_164, %c0_165] : memref<1x8x128xf32, #tpu.memory_space<vmem>>, vector<1x8x128xf32>
    %356 = vector.shape_cast %355 : vector<1x8x128xf32> to vector<8x128xf32>
    %357 = vector.shape_cast %354 : vector<8x128xf32> to vector<1x8x128xf32>
    tpu.vector_store %arg19[%c0_163, %c0_164, %c0_165], %357 {strides = array<i32>} : memref<1x8x128xf32, #tpu.memory_space<vmem>>, vector<1x8x128xf32>,
    return
  }
  func.func @transform_0(%arg0: i32) -> (i32, i32, i32) {
    %c0_i32 = arith.constant 0 : i32
    %c0_i32_0 = arith.constant 0 : i32
    %c0_i32_1 = arith.constant 0 : i32
    return %arg0, %c0_i32, %c0_i32_0 : i32, i32, i32
  }
  func.func @transform_1(%arg0: i32) -> (i32, i32) {
    %c0_i32 = arith.constant 0 : i32
    %c0_i32_0 = arith.constant 0 : i32
    %c0_i32_1 = arith.constant 0 : i32
    return %c0_i32, %c0_i32_0 : i32, i32
  }
  func.func @transform_2(%arg0: i32) -> (i32, i32) {
    %c0_i32 = arith.constant 0 : i32
    %c0_i32_0 = arith.constant 0 : i32
    %c0_i32_1 = arith.constant 0 : i32
    return %c0_i32, %c0_i32_0 : i32, i32
  }
  func.func @transform_3(%arg0: i32) -> (i32, i32) {
    %c0_i32 = arith.constant 0 : i32
    %c0_i32_0 = arith.constant 0 : i32
    %c0_i32_1 = arith.constant 0 : i32
    return %c0_i32, %c0_i32_0 : i32, i32
  }
  func.func @transform_4(%arg0: i32) -> (i32, i32, i32) {
    %c0_i32 = arith.constant 0 : i32
    %c0_i32_0 = arith.constant 0 : i32
    %c0_i32_1 = arith.constant 0 : i32
    %c0_i32_2 = arith.constant 0 : i32
    return %c0_i32, %c0_i32_0, %c0_i32_1 : i32, i32, i32
  }
  func.func @transform_5(%arg0: i32) -> (i32, i32, i32) {
    %c0_i32 = arith.constant 0 : i32
    %c0_i32_0 = arith.constant 0 : i32
    %c0_i32_1 = arith.constant 0 : i32
    %c0_i32_2 = arith.constant 0 : i32
    return %c0_i32, %c0_i32_0, %c0_i32_1 : i32, i32, i32
  }
  func.func @transform_6(%arg0: i32) -> (i32, i32, i32) {
    %c0_i32 = arith.constant 0 : i32
    %c0_i32_0 = arith.constant 0 : i32
    %c0_i32_1 = arith.constant 0 : i32
    %c0_i32_2 = arith.constant 0 : i32
    return %c0_i32, %c0_i32_0, %c0_i32_1 : i32, i32, i32
  }
  func.func @transform_7(%arg0: i32) -> (i32, i32, i32) {
    %c0_i32 = arith.constant 0 : i32
    %c0_i32_0 = arith.constant 0 : i32
    %c0_i32_1 = arith.constant 0 : i32
    %c0_i32_2 = arith.constant 0 : i32
    return %c0_i32, %c0_i32_0, %c0_i32_1 : i32, i32, i32
  }
  func.func @transform_8(%arg0: i32) -> (i32, i32, i32) {
    %c0_i32 = arith.constant 0 : i32
    %c0_i32_0 = arith.constant 0 : i32
    %c0_i32_1 = arith.constant 0 : i32
    %c0_i32_2 = arith.constant 0 : i32
    return %c0_i32, %c0_i32_0, %c0_i32_1 : i32, i32, i32
  }
  func.func @transform_9(%arg0: i32) -> (i32, i32, i32) {
    %c0_i32 = arith.constant 0 : i32
    %c0_i32_0 = arith.constant 0 : i32
    %c0_i32_1 = arith.constant 0 : i32
    %c0_i32_2 = arith.constant 0 : i32
    return %c0_i32, %c0_i32_0, %c0_i32_1 : i32, i32, i32
  }
  func.func @transform_10(%arg0: i32) -> (i32, i32, i32) {
    %c0_i32 = arith.constant 0 : i32
    %c0_i32_0 = arith.constant 0 : i32
    %c0_i32_1 = arith.constant 0 : i32
    %c0_i32_2 = arith.constant 0 : i32
    return %c0_i32, %c0_i32_0, %c0_i32_1 : i32, i32, i32
  }
  func.func @transform_11(%arg0: i32) -> (i32, i32, i32) {
    %c0_i32 = arith.constant 0 : i32
    %c0_i32_0 = arith.constant 0 : i32
    %c0_i32_1 = arith.constant 0 : i32
    %c0_i32_2 = arith.constant 0 : i32
    return %c0_i32, %c0_i32_0, %c0_i32_1 : i32, i32, i32
  }
  func.func @transform_12(%arg0: i32) -> (i32, i32, i32) {
    %c0_i32 = arith.constant 0 : i32
    %c0_i32_0 = arith.constant 0 : i32
    %c0_i32_1 = arith.constant 0 : i32
    %c0_i32_2 = arith.constant 0 : i32
    return %c0_i32, %c0_i32_0, %c0_i32_1 : i32, i32, i32
  }
  func.func @transform_13(%arg0: i32) -> (i32, i32, i32) {
    %c0_i32 = arith.constant 0 : i32
    %c0_i32_0 = arith.constant 0 : i32
    %c0_i32_1 = arith.constant 0 : i32
    %c0_i32_2 = arith.constant 0 : i32
    return %c0_i32, %c0_i32_0, %c0_i32_1 : i32, i32, i32
  }
  func.func @transform_14(%arg0: i32) -> (i32, i32, i32) {
    %c0_i32 = arith.constant 0 : i32
    %c0_i32_0 = arith.constant 0 : i32
    %c0_i32_1 = arith.constant 0 : i32
    %c0_i32_2 = arith.constant 0 : i32
    return %c0_i32, %c0_i32_0, %c0_i32_1 : i32, i32, i32
  }
  func.func @transform_15(%arg0: i32) -> (i32, i32, i32) {
    %c0_i32 = arith.constant 0 : i32
    %c0_i32_0 = arith.constant 0 : i32
    %c0_i32_1 = arith.constant 0 : i32
    %c0_i32_2 = arith.constant 0 : i32
    return %c0_i32, %c0_i32_0, %c0_i32_1 : i32, i32, i32
  }
  func.func @transform_16(%arg0: i32) -> (i32, i32) {
    %c0_i32 = arith.constant 0 : i32
    %c0_i32_0 = arith.constant 0 : i32
    %c0_i32_1 = arith.constant 0 : i32
    return %c0_i32, %c0_i32_0 : i32, i32
  }
  func.func @transform_17(%arg0: i32) -> (i32, i32) {
    %c0_i32 = arith.constant 0 : i32
    %c0_i32_0 = arith.constant 0 : i32
    %c0_i32_1 = arith.constant 0 : i32
    return %c0_i32, %c0_i32_0 : i32, i32
  }
  func.func @transform_18(%arg0: i32) -> (i32, i32, i32) {
    %c0_i32 = arith.constant 0 : i32
    %c0_i32_0 = arith.constant 0 : i32
    %c0_i32_1 = arith.constant 0 : i32
    return %arg0, %c0_i32, %c0_i32_0 : i32, i32, i32
  }
}

</mosaic_0001>

<bundles_post_ra>
// kernel: transformer_model_forward.1
= control target key start
LH: loop header
LB: loop body
LE: loop exit
PB: predicated region body
PF: predicated region fallthrough
CT: control target
= control target key end

     0   :  { %s4574_s0 = inlined_call_operand.vmem [shape: s32[2,8,1], index: 0, kind: input, shape index: {}]   ;;  %s4575_s1 = inlined_call_operand.vmem [shape: f32[48,32], index: 1, kind: input, shape index: {}]   ;;  %s4576_s2 = inlined_call_operand.vmem [shape: f32[8,32], index: 2, kind: input, shape index: {}]   ;;  %s4577_s3 = inlined_call_operand.vmem [shape: f32[8,8], index: 3, kind: input, shape index: {}]   ;;  %s4578_s4 = inlined_call_operand.vmem [shape: f32[2,32,96], index: 4, kind: input, shape index: {}]   ;;  %s4579_s5 = inlined_call_operand.vmem [shape: f32[2,1,96], index: 5, kind: input, shape index: {}]   ;;  %s4580_s6 = inlined_call_operand.vmem [shape: f32[2,32,32], index: 6, kind: input, shape index: {}]   ;;  %s4581_s7 = inlined_call_operand.vmem [shape: f32[2,1,32], index: 7, kind: input, shape index: {}]   ;;  %s4582_s8 = inlined_call_operand.vmem [shape: f32[2,32,64], index: 8, kind: input, shape index: {}]   ;;  %s4583_s9 = inlined_call_operand.vmem [shape: f32[2,1,64], index: 9, kind: input, shape index: {}]   ;;  %s4584_s10 = inlined_call_operand.vmem [shape: f32[2,64,32], index: 10, kind: input, shape index: {}]   ;;  %s4585_s11 = inlined_call_operand.vmem [shape: f32[2,1,32], index: 11, kind: input, shape index: {}]   ;;  %s4586_s12 = inlined_call_operand.vmem [shape: f32[2,1,32], index: 12, kind: input, shape index: {}]   ;;  %s4587_s13 = inlined_call_operand.vmem [shape: f32[2,1,32], index: 13, kind: input, shape index: {}]   ;;  %s4588_s14 = inlined_call_operand.vmem [shape: f32[2,1,32], index: 14, kind: input, shape index: {}]   ;;  %s4589_s15 = inlined_call_operand.vmem [shape: f32[2,1,32], index: 15, kind: input, shape index: {}]   ;;  %s4590_s16 = inlined_call_operand.vmem [shape: f32[32,128], index: 16, kind: input, shape index: {}]   ;;  %s4591_s17 = inlined_call_operand.hbm [shape: f32[1,128], index: 17, kind: input, shape index: {}]   ;;  %s4592_s18 = inlined_call_operand.vmem [shape: f32[2,8,128], index: 18, kind: output, shape index: {}]  }
   0x1   :  { %4602 = sst [smem:[#allocation5_spill]] %s4574_s0 }
   0x2   :  { %4603 = sst [smem:[#allocation6_spill]] %s4575_s1 }
   0x3   :  { %4604 = sst [smem:[#allocation7_spill]] %s4576_s2 }
   0x4   :  { %23 = vsyncpa [#allocation3], 0  ;;  %s4056_s27 = smov 0  }
   0x5 LB: > { %s4062_s28 = sadd.s32 4294967295, %s3944_s27   ;;  %p3413_p0 = scmp.ge.s32.totalorder %s3944_s27, 1  ;;  %s3944_s27 = sphi %s4056_s27, %s29_s27  }
   0x6   : > { %p443_p1 = scmp.lt.s32.totalorder %s3944_s27, 3  ;;  %p3842_p3 = scmp.eq.s32.totalorder %s4062_s28, 0 }
   0x7   : > { %s3946_s30 = smov [#allocation2]  }
   0x8   : > { %p4066_p2 = pnand %p3413_p0, %p443_p1  ;;  %s504_s0 = sshll.u32 %s3946_s30, 4  ;;  %s505_s0 = int_to_ptr.vmem [resolvable:$true] %s504_s0 }
   0x9   : > { %s3919_s19 = scalar_lea.vmem %s505_s0, 16  ;;  %s3926_s1 = scalar_lea.vmem %s505_s0, 32 }
   0xa   : > { %p3838_p4 = pneg %p4066_p2  ;;  %p3920_p7 = scmp.ne.s32.totalorder %s505_s0, %s3919_s19 }
   0xb   : > { %p3927_p10 = scmp.lt.s32.totalorder %s505_s0, %s505_s0  ;;  %p3928_p11 = scmp.lt.s32.totalorder %s3926_s1, %s3919_s19 }
   0xc   : > { %p3839_p5 = pnand %p3842_p3, %p3838_p4 }
   0xd   : > { %p3929_p12 = por %p3928_p11, %p3927_p10 }
   0xe   : > { %p3910_p6 = pneg %p3839_p5 }
  0x10   : > { %p3922_p8 = pnand %p3920_p7, %p3910_p6 }
  0x12   : > { %p3923_p9 = pneg %p3922_p8 }
  0x14   : > { %p3930_p13 = pnand %p3929_p12, %p3923_p9 }
  0x16   : > { %3933 = shalt.err (!%p3930_p13)
}
  0x17   : > { %3841 = dma.hbm_to_vmem [thread:$0]  (!%p3839_p5), %s4591_s17, 16, %s505_s0, [#allocation3]  }
  0x18   : > { %524 = sbr.rel (%p4066_p2) target bundleno = 7439 (0x1d0f), region = 92 }
  0x1d   : > { %3939 = dma.done.wait (%p3842_p3), [#allocation3], 16  }
  0x1e   : > { %3941 = vsyncadd (%p3842_p3), [#allocation3], 4294967280  ;;  %p576_p0 = scmp.lt.s32.totalorder %s4062_s28, 1  ;;  %v3947_v0 = vmov 0   ;;  %v3948_v1 = vmov 0.0   ;;  %s4606_s24 = sld [smem:[#allocation5_spill]]  ;;  %v585_v10 = vlaneseq }
  0x1f   : > { %3867 = vset.pattern.permute.xlu0 %v3947_v0  ;;  %3606 = vmatprep.subr.mxu0 %v3948_v1  ;;  %vm3949_vm0 = vmmov 0   ;;  %s4607_s30 = sld [smem:[#allocation6_spill]]  ;;  %v680_v6 = vld [vmem:[%s4578_s4 + $0x18] sm:$0xff]  ;;  %vm599_vm1 = vcmask 392192   ;;  %v679_v14 = vld [vmem:[%s4578_s4 + $0x10] sm:$0xff]  ;;  %v678_v15 = vld [vmem:[%s4578_s4 + $0x8] sm:$0xff] }
  0x20   : > { %s4618_s28 = smov (!%p576_p0, %s4062_s28), 1  ;;  %3621 = vmatprep.subr.mxu1 %v3948_v1  ;;  %3618 = vmatprep.mubr.msk.f32.mxu0 %vm3949_vm0, %v3948_v1  ;;  %v586_v11 = vand.u32 127, %v585_v10  ;;  %v677_v16 = vld [vmem:[%s4578_s4] sm:$0xff]  ;;  %s4608_s26 = sld [smem:[#allocation7_spill]]  ;;  %vm707_vm3 = vcmask 261120   ;;  %vm785_vm4 = vcmask 64512  }
  0x21   : > { %s4594_s22 = sshll.u32 %s4618_s28, 3  ;;  %3629 = vmatprep.mubr.msk.f32.mxu1 %vm3949_vm0, %v3948_v1  ;;  %3622 = vmatpush3.msra.mxu1 %v680_v6  ;;  %v3422_v22 = vld [vmem:[%s4579_s5] ss:$0 sm:$0xff]  ;;  %s3950_s19 = smov 88   ;;  %v683_v58 = vld [vmem:[%s4580_s6 + $0x8] sm:$0xff]  ;;  %vm1861_vm5 = vcmask 523264  }
  0x22   : > { %3623 = vmatprep.subr.mxu1 %v3948_v1  ;;  %s3951_s1 = smov 96   ;;  %s3952_s20 = smov 120   ;;  %v4180_v30 = vld [vmem:[%s4577_s3] sm:$0xff] }
  0x23   : > { %3624 = vmatpush3.msra.mxu1 %v679_v14  ;;  %s4600_s23 = smov 64   ;;  %v682_v57 = vld [vmem:[%s4580_s6] sm:$0xff]  ;;  %s4595_s29 = smov 48  }
  0x24   : > { %s579_s25 = scalar_lea.vmem %s4606_s24, %s4594_s22  ;;  %3625 = vmatprep.subr.mxu1 %v3948_v1  ;;  %s4601_s24 = smov 80  }
  0x25   : > { %v584_v2 = vld [vmem:[%s579_s25] sm:$0xff]  ;;  %v598_v3 = vld [vmem:[%s4607_s30 + $0x28] sm:$0xff]  ;;  %v596_v5 = vld [vmem:[%s4607_s30 + $0x18] sm:$0xff]  ;;  %3626 = vmatpush3.msra.mxu1 %v678_v15  ;;  %s4599_s25 = smov 112   ;;  %s4597_s0 = smov 104  }
  0x26   : > { %v597_v4 = vld [vmem:[%s4607_s30 + $0x20] sm:$0xff]  ;;  %588 = vperm.xlu0 %3867, %v584_v2   ;;  %3607 = vmatpush3.msra.mxu0 %v598_v3  ;;  %v595_v7 = vld [vmem:[%s4607_s30 + $0x10] sm:$0xff]  ;;  %v594_v8 = vld [vmem:[%s4607_s30 + $0x8] sm:$0xff]  ;;  %s4598_s21 = smov 72   ;;  %s4596_s22 = smov 40  }
  0x27   : > { %3608 = vmatprep.subr.mxu0 %v3948_v1  ;;  %v593_v9 = vld [vmem:[%s4607_s30] sm:$0xff]  ;;  %3627 = vmatprep.subr.mxu1 %v3948_v1  ;;  %s4614_s2 = smov 48  }
  0x28   : > { %3609 = vmatpush3.msra.mxu0 %v597_v4  ;;  %3628 = vmatpush3.msra.mxu1 %v677_v16  ;;  %v674_v18 = vld [vmem:[%s4608_s26] sm:$0xff]  ;;  %s3956_s26 = smov 56  }
  0x29   : > { %3610 = vmatprep.subr.mxu0 %v3948_v1  ;;  %3632 = vmatprep.subr.mxu1 %v3948_v1 }
  0x2a   : > { %3611 = vmatpush3.msra.mxu0 %v596_v5 }
  0x2b   : > { %3612 = vmatprep.subr.mxu0 %v3948_v1 }
  0x2c   : > { %3613 = vmatpush3.msra.mxu0 %v595_v7 }
  0x2d   : > { %3614 = vmatprep.subr.mxu0 %v3948_v1 }
  0x2e   : > { %3615 = vmatpush3.msra.mxu0 %v594_v8 }
  0x2f   : > { %3616 = vmatprep.subr.mxu0 %v3948_v1 }
  0x30   : > { %3617 = vmatpush3.msra.mxu0 %v593_v9 }
  0x31   : > { %3637 = vmatprep.subr.mxu0 %v3948_v1 }
  0xa1   : > { %v589_v12 = vpop.permute.xlu0 %588 }
  0xa2   : > { %vm590_vm2 = vcmp.eq.s32.totalorder %v586_v11, %v589_v12 }
  0xa3   : > { %v3420_v13 = vsel %vm590_vm2, 1.0, %v3948_v1 }
  0xa4   : > { %3619 = vmatmul.mubr.msk.f32.vlgmr.msra.gmra.mxu0 %vm599_vm1, %v3420_v13 }
  0xa5   : > { %3639 = vmatprep.mubr.msk.f32.mxu0 %vm3949_vm0, %v3948_v1 }
 0x164   : > { %v669_v17 = vpop.f32.mrf.mxu0 }
 0x165   : > { %v673_v19 = vmul.f32 5.656854, %v669_v17 }
 0x166   : > { %v3620_v20 = vpop.f32.mrf.mxu0 }
 0x167   : > { %v4146_v21 = vadd.f32 %v674_v18, %v673_v19 }
 0x169   : > { %3630 = vmatmul.mubr.msk.f32.vlgmr.msra.gmra.mxu1 %vm707_vm3, %v4146_v21 }
 0x16a   : > { %3634 = vmatprep.mubr.msk.f32.mxu1 %vm3949_vm0, %v3948_v1 }
 0x229   : > { %v777_v23 = vpop.f32.mrf.mxu1 }
 0x22a   : > { %v4155_v24 = vadd.f32 %v3422_v22, %v777_v23  ;;  %v684_v23 = vld [vmem:[%s4580_s6 + $0x10] sm:$0xff] }
 0x22b   : > { %v3631_v25 = vpop.f32.mrf.mxu1 }
 0x22c   : > { %950 = vrot.lane.b32.xlu1 %v4155_v24, %s3950_s19  ;;  %783 = vrot.lane.b32.xlu0 %v4155_v24, %s3951_s1  ;;  %v4162_v26 = vmul.f32 0.35355338, %v4155_v24 }
 0x230   : > { %948 = vrot.lane.b32.xlu1 %v4162_v26, %s3952_s20 }
 0x29e   : > { %v784_v27 = vpop.permute.xlu0 %783  ;;  %v951_v28 = vpop.permute.xlu1 %950 }
 0x29f   : > { %3633 = vmatpush3.xpose.msk.msra.mxu1 %vm785_vm4, %v784_v27 }
 0x2a0   : > { %3642 = vmatprep.subr.mxu1 %v3948_v1 }
 0x2a2   : > { %3635 = vmatmul.mubr.msk.f32.vlgmr.msra.gmra.mxu1 %vm785_vm4, %v4162_v26  ;;  %v949_v29 = vpop.permute.xlu1 %948 }
 0x2a3   : > { %3643 = vmatpush3.xpose.msk.msra.mxu1 %vm785_vm4, %v951_v28  ;;  %3644 = vmatprep.mubr.msk.f32.mxu1 %vm3949_vm0, %v3948_v1 }
 0x2a4   : > { %3652 = vmatprep.subr.mxu1 %v3948_v1 }
 0x2a6   : > { %3645 = vmatmul.mubr.msk.f32.vlgmr.msra.gmra.mxu1 %vm785_vm4, %v949_v29 }
 0x2a7   : > { %3654 = vmatprep.mubr.msk.f32.mxu1 %vm3949_vm0, %v3948_v1  ;;  %3653 = vmatpush3.msra.mxu1 %v683_v58  ;;  %v690_v58 = vld [vmem:[%s4582_s8 + $0x18] sm:$0xff] }
 0x2a8   : > { %3662 = vmatprep.subr.mxu1 %v3948_v1 }
 0x362   : > { %v857_v31 = vpop.f32.mrf.mxu1 }
 0x363   : > { %v858_v32 = vadd.f32 %v857_v31, %v4180_v30 }
 0x364   : > { %v3636_v33 = vpop.f32.mrf.mxu1 }
 0x365   : > { %v861_v34 = vsel %vm785_vm4, %v858_v32, -inf }
 0x366   : > { %862 = vmax.xlane.f32.xlu0 %v861_v34  ;;  %v1022_v35 = vpop.f32.mrf.mxu1 }
 0x367   : > { %v1023_v36 = vadd.f32 %v1022_v35, %v4180_v30 }
 0x368   : > { %v3646_v37 = vpop.f32.mrf.mxu1 }
 0x369   : > { %v1026_v38 = vsel %vm785_vm4, %v1023_v36, -inf  ;;  %v685_v37 = vld [vmem:[%s4580_s6 + $0x18] sm:$0xff] }
 0x36a   : > { %1027 = vmax.xlane.f32.xlu1 %v1026_v38 }
 0x37b   : > { %872 = vrot.lane.b32.xlu1 %v4155_v24, %s4600_s23 }
 0x37f   : > { %1261 = vrot.lane.b32.xlu1 %v4155_v24, %s4601_s24 }
 0x383   : > { %1259 = vrot.lane.b32.xlu1 %v4162_v26, %s4599_s25 }
 0x3ef   : > { %v863_v39 = vpop.xlane.xlu0 %862 }
 0x3f0   : > { %v864_v40 = vsub.f32 %v858_v32, %v863_v39 }
 0x3f2   : > { %v865_v41 = vmul.f32 1.442695, %v864_v40 }
 0x3f3   : > { %v1028_v42 = vpop.xlane.xlu1 %1027 }
 0x3f4   : > { %3868 = vpow2.f32 %v865_v41  ;;  %v1029_v43 = vsub.f32 %v1023_v36, %v1028_v42 }
 0x3f6   : > { %v1030_v44 = vmul.f32 1.442695, %v1029_v43 }
 0x3f7   : > { %v873_v45 = vpop.permute.xlu1 %872 }
 0x3f8   : > { %3870 = vpow2.f32 %v1030_v44  ;;  %3638 = vmatpush3.msra.mxu0 %v873_v45 }
 0x3f9   : > { %3647 = vmatprep.subr.mxu0 %v3948_v1 }
 0x3fb   : > { %v1262_v60 = vpop.permute.xlu1 %1261 }
 0x3ff   : > { %v1260_v0 = vpop.permute.xlu1 %1259 }
 0x401   : > { %v3869_v46 = vpop.eup %3868 }
 0x402   : > { %v867_v47 = vsel %vm785_vm4, %v3869_v46, 0.0 }
 0x403   : > { %868 = vadd.xlane.f32.xlu0 %v867_v47 }
 0x405   : > { %v3871_v48 = vpop.eup %3870 }
 0x406   : > { %v1032_v49 = vsel %vm785_vm4, %v3871_v48, 0.0 }
 0x407   : > { %1033 = vadd.xlane.f32.xlu0 %v1032_v49 }
 0x41d   : > { %1037 = vrot.lane.b32.xlu0 %v4155_v24, %s3956_s26 }
 0x48c   : > { %v869_v50 = vpop.xlane.xlu0 %868 }
 0x48d   : > { %3872 = vrcp.f32 %v869_v50 }
 0x490   : > { %v1034_v51 = vpop.xlane.xlu0 %1033 }
 0x491   : > { %3874 = vrcp.f32 %v1034_v51 }
 0x494   : > { %v1038_v54 = vpop.permute.xlu0 %1037 }
 0x49a   : > { %v3873_v52 = vpop.eup %3872 }
 0x49b   : > { %v871_v53 = vmul.f32 %v3873_v52, %v3869_v46  ;;  %v3440_v46 = vld [vmem:[%s4581_s7] ss:$0 sm:$0xff] }
 0x49d   : > { %3640 = vmatmul.mubr.msk.f32.vlgmr.msra.gmra.mxu0 %vm785_vm4, %v871_v53 }
 0x49e   : > { %v3875_v55 = vpop.eup %3874  ;;  %3648 = vmatpush3.msra.mxu0 %v1038_v54  ;;  %3649 = vmatprep.mubr.msk.f32.mxu0 %vm3949_vm0, %v3948_v1 }
 0x49f   : > { %v1036_v56 = vmul.f32 %v3875_v55, %v3871_v48  ;;  %3657 = vmatprep.subr.mxu0 %v3948_v1 }
 0x4a1   : > { %3650 = vmatmul.mubr.msk.f32.vlgmr.msra.gmra.mxu0 %vm785_vm4, %v1036_v56 }
 0x4a2   : > { %3659 = vmatprep.mubr.msk.f32.mxu0 %vm3949_vm0, %v3948_v1  ;;  %3658 = vmatpush3.msra.mxu0 %v682_v57 }
 0x4a3   : > { %3667 = vmatprep.subr.mxu0 %v3948_v1 }
 0x55d   : > { %v944_v59 = vpop.f32.mrf.mxu0 }
 0x55e   : > { %3660 = vmatmul.mubr.msk.f32.vlgmr.msra.gmra.mxu0 %vm785_vm4, %v944_v59  ;;  %v689_v59 = vld [vmem:[%s4582_s8 + $0x10] sm:$0xff] }
 0x55f   : > { %v3641_v61 = vpop.f32.mrf.mxu0  ;;  %3669 = vmatprep.mubr.msk.f32.mxu0 %vm3949_vm0, %v3948_v1 }
 0x560   : > { %v699_v61 = vld [vmem:[%s4584_s10 + $0x38] sm:$0xff] }
 0x561   : > { %v1109_v62 = vpop.f32.mrf.mxu0 }
 0x562   : > { %3655 = vmatmul.mubr.msk.f32.vlgmr.msra.gmra.mxu1 %vm785_vm4, %v1109_v62  ;;  %v698_v62 = vld [vmem:[%s4584_s10 + $0x30] sm:$0xff] }
 0x563   : > { %3663 = vmatpush3.xpose.msk.msra.mxu1 %vm785_vm4, %v1262_v60  ;;  %v3651_v63 = vpop.f32.mrf.mxu0  ;;  %3664 = vmatprep.mubr.msk.f32.mxu1 %vm3949_vm0, %v3948_v1  ;;  %v687_v60 = vld [vmem:[%s4582_s8] sm:$0xff] }
 0x564   : > { %3672 = vmatprep.subr.mxu1 %v3948_v1  ;;  %v697_v63 = vld [vmem:[%s4584_s10 + $0x28] sm:$0xff] }
 0x566   : > { %3665 = vmatmul.mubr.msk.f32.vlgmr.msra.gmra.mxu1 %vm785_vm4, %v1260_v0  ;;  %v696_v0 = vld [vmem:[%s4584_s10 + $0x20] sm:$0xff] }
 0x567   : > { %3674 = vmatprep.mubr.msk.f32.mxu1 %vm3949_vm0, %v3948_v1  ;;  %3673 = vmatpush3.msra.mxu1 %v684_v23 }
 0x568   : > { %3682 = vmatprep.subr.mxu1 %v3948_v1 }
 0x61e   : > { %v1255_v2 = vpop.f32.mrf.mxu0 }
 0x620   : > { %v3661_v3 = vpop.f32.mrf.mxu0 }
 0x622   : > { %v1182_v4 = vpop.f32.mrf.mxu1 }
 0x623   : > { %v1256_v5 = vadd.f32 %v1255_v2, %v1182_v4  ;;  %v695_v2 = vld [vmem:[%s4584_s10 + $0x18] sm:$0xff] }
 0x624   : > { %v3656_v6 = vpop.f32.mrf.mxu1 }
 0x626   : > { %v1333_v7 = vpop.f32.mrf.mxu1 }
 0x627   : > { %v1334_v8 = vadd.f32 %v1333_v7, %v4180_v30  ;;  %v3441_v7 = vld [vmem:[%s4586_s12] ss:$0 sm:$0xff] }
 0x628   : > { %v3666_v9 = vpop.f32.mrf.mxu1 }
 0x629   : > { %v1337_v10 = vsel %vm785_vm4, %v1334_v8, -inf  ;;  %v3442_v9 = vld [vmem:[%s4587_s13] ss:$0 sm:$0xff] }
 0x62a   : > { %1338 = vmax.xlane.f32.xlu0 %v1337_v10 }
 0x640   : > { %1348 = vrot.lane.b32.xlu0 %v4155_v24, %s4595_s29  ;;  %s4613_s29 = smov 104  }
 0x644   : > { %1498 = vrot.lane.b32.xlu0 %v4162_v26, %s4597_s0 }
 0x6b3   : > { %v1339_v11 = vpop.xlane.xlu0 %1338 }
 0x6b4   : > { %v1340_v12 = vsub.f32 %v1334_v8, %v1339_v11 }
 0x6b6   : > { %v1341_v13 = vmul.f32 1.442695, %v1340_v12  ;;  %v694_v12 = vld [vmem:[%s4584_s10 + $0x10] sm:$0xff] }
 0x6b7   : > { %v1349_v14 = vpop.permute.xlu0 %1348 }
 0x6b8   : > { %3876 = vpow2.f32 %v1341_v13  ;;  %3668 = vmatpush3.msra.mxu0 %v1349_v14  ;;  %v693_v13 = vld [vmem:[%s4584_s10 + $0x8] sm:$0xff]  ;;  %v692_v14 = vld [vmem:[%s4584_s10] sm:$0xff] }
 0x6b9   : > { %3677 = vmatprep.subr.mxu0 %v3948_v1 }
 0x6bb   : > { %v1499_v22 = vpop.permute.xlu0 %1498 }
 0x6c5   : > { %v3877_v15 = vpop.eup %3876 }
 0x6c6   : > { %v1343_v16 = vsel %vm785_vm4, %v3877_v15, 0.0 }
 0x6c7   : > { %1344 = vadd.xlane.f32.xlu1 %v1343_v16 }
 0x6d8   : > { %1500 = vrot.lane.b32.xlu1 %v4155_v24, %s4598_s21 }
 0x750   : > { %v1345_v17 = vpop.xlane.xlu1 %1344 }
 0x751   : > { %3878 = vrcp.f32 %v1345_v17 }
 0x754   : > { %v1501_v20 = vpop.permute.xlu1 %1500 }
 0x75e   : > { %v3879_v18 = vpop.eup %3878 }
 0x75f   : > { %v1347_v19 = vmul.f32 %v3879_v18, %v3877_v15  ;;  %v3443_v15 = vld [vmem:[%s4583_s9] ss:$0 sm:$0xff] }
 0x761   : > { %3670 = vmatmul.mubr.msk.f32.vlgmr.msra.gmra.mxu0 %vm785_vm4, %v1347_v19 }
 0x762   : > { %3678 = vmatpush3.xpose.msk.msra.mxu0 %vm785_vm4, %v1501_v20  ;;  %3679 = vmatprep.mubr.msk.f32.mxu0 %vm3949_vm0, %v3948_v1  ;;  %v3445_v20 = vld [vmem:[%s4585_s11] ss:$0 sm:$0xff] }
 0x763   : > { %3687 = vmatprep.subr.mxu0 %v3948_v1 }
 0x765   : > { %3680 = vmatmul.mubr.msk.f32.vlgmr.msra.gmra.mxu0 %vm785_vm4, %v1499_v22 }
 0x766   : > { %3689 = vmatprep.mubr.msk.f32.mxu0 %vm3949_vm0, %v3948_v1  ;;  %3688 = vmatpush3.msra.mxu0 %v685_v37  ;;  %v3449_v37 = vld [vmem:[%s4578_s4 + $0x20] sm:$0xff] }
 0x767   : > { %3703 = vmatprep.subr.mxu0 %v3948_v1 }
 0x821   : > { %v1420_v25 = vpop.f32.mrf.mxu0 }
 0x822   : > { %3675 = vmatmul.mubr.msk.f32.vlgmr.msra.gmra.mxu1 %vm785_vm4, %v1420_v25 }
 0x823   : > { %v3671_v26 = vpop.f32.mrf.mxu0  ;;  %3684 = vmatprep.mubr.msk.f32.mxu1 %vm3949_vm0, %v3948_v1 }
 0x825   : > { %v1572_v27 = vpop.f32.mrf.mxu0 }
 0x826   : > { %v1573_v28 = vadd.f32 %v1572_v27, %v4180_v30 }
 0x827   : > { %v3681_v29 = vpop.f32.mrf.mxu0 }
 0x828   : > { %v1576_v31 = vsel %vm785_vm4, %v1573_v28, -inf }
 0x829   : > { %1577 = vmax.xlane.f32.xlu1 %v1576_v31 }
 0x8b2   : > { %v1578_v32 = vpop.xlane.xlu1 %1577 }
 0x8b3   : > { %v1579_v33 = vsub.f32 %v1573_v28, %v1578_v32 }
 0x8b5   : > { %v1580_v34 = vmul.f32 1.442695, %v1579_v33 }
 0x8b7   : > { %3880 = vpow2.f32 %v1580_v34  ;;  %v3452_v34 = vld [vmem:[%s4578_s4 + $0x38] sm:$0xff] }
 0x8c4   : > { %v3881_v35 = vpop.eup %3880 }
 0x8c5   : > { %v1582_v36 = vsel %vm785_vm4, %v3881_v35, 0.0 }
 0x8c6   : > { %1583 = vadd.xlane.f32.xlu0 %v1582_v36  ;;  %v3450_v36 = vld [vmem:[%s4578_s4 + $0x28] sm:$0xff] }
 0x8dc   : > { %1587 = vrot.lane.b32.xlu0 %v4155_v24, %s4596_s22  ;;  %s4612_s22 = smov 72  }
 0x8e2   : > { %v1493_v38 = vpop.f32.mrf.mxu1 }
 0x8e3   : > { %v1497_v39 = vadd.f32 %v1493_v38, %v1256_v5 }
 0x8e4   : > { %v3676_v40 = vpop.f32.mrf.mxu1 }
 0x94f   : > { %v1584_v41 = vpop.xlane.xlu0 %1583 }
 0x950   : > { %3882 = vrcp.f32 %v1584_v41 }
 0x953   : > { %v1588_v42 = vpop.permute.xlu0 %1587 }
 0x954   : > { %3683 = vmatpush3.msra.mxu1 %v1588_v42  ;;  %v3447_v42 = vld [vmem:[%s4588_s14] ss:$0 sm:$0xff] }
 0x955   : > { %3692 = vmatprep.subr.mxu1 %v3948_v1 }
 0x95d   : > { %v3883_v43 = vpop.eup %3882 }
 0x95e   : > { %v1586_v44 = vmul.f32 %v3883_v43, %v3881_v35  ;;  %v3451_v35 = vld [vmem:[%s4578_s4 + $0x30] sm:$0xff] }
 0x960   : > { %3685 = vmatmul.mubr.msk.f32.vlgmr.msra.gmra.mxu1 %vm785_vm4, %v1586_v44  ;;  %v3448_v44 = vld [vmem:[%s4589_s15] ss:$0 sm:$0xff] }
 0x961   : > { %3700 = vmatprep.mubr.msk.f32.mxu1 %vm3949_vm0, %v3948_v1  ;;  %3693 = vmatpush3.msra.mxu1 %v690_v58 }
 0x962   : > { %3694 = vmatprep.subr.mxu1 %v3948_v1 }
 0x963   : > { %3695 = vmatpush3.msra.mxu1 %v689_v59 }
 0x964   : > { %3696 = vmatprep.subr.mxu1 %v3948_v1 }
 0xa20   : > { %v1659_v24 = vpop.f32.mrf.mxu1 }
 0xa21   : > { %3690 = vmatmul.mubr.msk.f32.vlgmr.msra.gmra.mxu0 %vm785_vm4, %v1659_v24 }
 0xa22   : > { %v3686_v45 = vpop.f32.mrf.mxu1  ;;  %3719 = vmatprep.mubr.msk.f32.mxu0 %vm3949_vm0, %v3948_v1  ;;  %3704 = vmatpush3.msra.mxu0 %v699_v61 }
 0xa23   : > { %3705 = vmatprep.subr.mxu0 %v3948_v1 }
 0xa24   : > { %3706 = vmatpush3.msra.mxu0 %v698_v62 }
 0xa25   : > { %3707 = vmatprep.subr.mxu0 %v3948_v1 }
 0xa26   : > { %3708 = vmatpush3.msra.mxu0 %v697_v63 }
 0xa27   : > { %3709 = vmatprep.subr.mxu0 %v3948_v1 }
 0xa28   : > { %3710 = vmatpush3.msra.mxu0 %v696_v0 }
 0xa29   : > { %3711 = vmatprep.subr.mxu0 %v3948_v1 }
 0xa2a   : > { %3712 = vmatpush3.msra.mxu0 %v695_v2 }
 0xa2b   : > { %3713 = vmatprep.subr.mxu0 %v3948_v1 }
 0xa2c   : > { %3714 = vmatpush3.msra.mxu0 %v694_v12 }
 0xa2d   : > { %3715 = vmatprep.subr.mxu0 %v3948_v1 }
 0xa2e   : > { %3716 = vmatpush3.msra.mxu0 %v693_v13 }
 0xa2f   : > { %3717 = vmatprep.subr.mxu0 %v3948_v1 }
 0xa30   : > { %3718 = vmatpush3.msra.mxu0 %v692_v14 }
 0xa31   : > { %3738 = vmatprep.subr.mxu0 %v3948_v1 }
 0xae1   : > { %v1732_v47 = vpop.f32.mrf.mxu0 }
 0xae2   : > { %v1736_v48 = vadd.f32 %v1732_v47, %v1497_v39 }
 0xae3   : > { %v3691_v49 = vpop.f32.mrf.mxu0 }
 0xae4   : > { %v1743_v50 = vadd.f32 %v3440_v46, %v1736_v48  ;;  %v3473_v46 = vld [vmem:[%s4579_s5 + $0x1] ss:$0 sm:$0xff] }
 0xae6   : > { %v1744_v51 = vadd.f32 %v1743_v50, %v4146_v21  ;;  %v688_v21 = vld [vmem:[%s4582_s8 + $0x8] sm:$0xff] }
 0xae7   : > { %3697 = vmatpush3.msra.mxu1 %v688_v21 }
 0xae8   : > { %v1747_v52 = vsel %vm707_vm3, %v1744_v51, 0.0  ;;  %3698 = vmatprep.subr.mxu1 %v3948_v1 }
 0xae9   : > { %1748 = vadd.xlane.f32.xlu1 %v1747_v52  ;;  %3699 = vmatpush3.msra.mxu1 %v687_v60 }
 0xaea   : > { %3722 = vmatprep.subr.mxu1 %v3948_v1 }
 0xb72   : > { %v1749_v53 = vpop.xlane.xlu1 %1748 }
 0xb73   : > { %v1751_v54 = vmul.f32 0.03125, %v1749_v53 }
 0xb75   : > { %v1752_v55 = vsub.f32 %v1744_v51, %v1751_v54 }
 0xb77   : > { %v1753_v56 = vmul.f32 %v1752_v55, %v1752_v55 }
 0xb79   : > { %v1754_v57 = vsel %vm707_vm3, %v1753_v56, 0.0 }
 0xb7a   : > { %1755 = vadd.xlane.f32.xlu1 %v1754_v57 }
 0xc03   : > { %v1756_v3 = vpop.xlane.xlu1 %1755 }
 0xc04   : > { %v1757_v4 = vmul.f32 0.03125, %v1756_v3 }
 0xc06   : > { %v1758_v5 = vadd.f32 1e-05, %v1757_v4 }
 0xc08   : > { %3884 = vrsqrt.f32 %v1758_v5 }
 0xc15   : > { %v3885_v6 = vpop.eup %3884 }
 0xc16   : > { %v1760_v8 = vmul.f32 %v3885_v6, %v1752_v55 }
 0xc18   : > { %v1767_v10 = vmul.f32 %v3441_v7, %v1760_v8 }
 0xc1a   : > { %v1774_v11 = vadd.f32 %v3442_v9, %v1767_v10 }
 0xc1c   : > { %3701 = vmatmul.mubr.msk.f32.vlgmr.msra.gmra.mxu1 %vm707_vm3, %v1774_v11 }
 0xc1d   : > { %3730 = vmatprep.mubr.msk.f32.mxu1 %vm3949_vm0, %v3948_v1  ;;  %3723 = vmatpush3.msra.mxu1 %v3452_v34 }
 0xc1e   : > { %3724 = vmatprep.subr.mxu1 %v3948_v1 }
 0xc1f   : > { %3725 = vmatpush3.msra.mxu1 %v3451_v35 }
 0xc20   : > { %3726 = vmatprep.subr.mxu1 %v3948_v1 }
 0xc21   : > { %3727 = vmatpush3.msra.mxu1 %v3450_v36 }
 0xc22   : > { %3728 = vmatprep.subr.mxu1 %v3948_v1 }
 0xc23   : > { %3729 = vmatpush3.msra.mxu1 %v3449_v37 }
 0xc24   : > { %3733 = vmatprep.subr.mxu1 %v3948_v1 }
 0xcdc   : > { %v1850_v16 = vpop.f32.mrf.mxu1 }
 0xcdd   : > { %v1851_v17 = vadd.f32 %v3443_v15, %v1850_v16  ;;  %v3454_v16 = vld [vmem:[%s4580_s6 + $0x20] sm:$0xff] }
 0xcde   : > { %v3702_v18 = vpop.f32.mrf.mxu1 }
 0xcdf   : > { %v1854_v19 = vmax.f32 %v1851_v17, 0.0  ;;  %v3455_v17 = vld [vmem:[%s4580_s6 + $0x28] sm:$0xff] }
 0xce1   : > { %3720 = vmatmul.mubr.msk.f32.vlgmr.msra.gmra.mxu0 %vm1861_vm5, %v1854_v19 }
 0xce2   : > { %3740 = vmatprep.mubr.msk.f32.mxu0 %vm3949_vm0, %v3948_v1 }
 0xda1   : > { %v1931_v22 = vpop.f32.mrf.mxu0 }
 0xda2   : > { %v1932_v23 = vadd.f32 %v3445_v20, %v1931_v22 }
 0xda3   : > { %v3721_v25 = vpop.f32.mrf.mxu0 }
 0xda4   : > { %v1935_v26 = vadd.f32 %v1932_v23, %v1774_v11 }
 0xda6   : > { %v1938_v27 = vsel %vm707_vm3, %v1935_v26, 0.0 }
 0xda7   : > { %1939 = vadd.xlane.f32.xlu1 %v1938_v27 }
 0xe30   : > { %v1940_v28 = vpop.xlane.xlu1 %1939 }
 0xe31   : > { %v1941_v29 = vmul.f32 0.03125, %v1940_v28 }
 0xe33   : > { %v1942_v31 = vsub.f32 %v1935_v26, %v1941_v29 }
 0xe35   : > { %v1943_v32 = vmul.f32 %v1942_v31, %v1942_v31 }
 0xe37   : > { %v1944_v33 = vsel %vm707_vm3, %v1943_v32, 0.0 }
 0xe38   : > { %1945 = vadd.xlane.f32.xlu1 %v1944_v33 }
 0xec1   : > { %v1946_v38 = vpop.xlane.xlu1 %1945 }
 0xec2   : > { %v1947_v39 = vmul.f32 0.03125, %v1946_v38 }
 0xec4   : > { %v1948_v40 = vadd.f32 1e-05, %v1947_v39 }
 0xec6   : > { %3886 = vrsqrt.f32 %v1948_v40 }
 0xed3   : > { %v3887_v41 = vpop.eup %3886 }
 0xed4   : > { %v1950_v43 = vmul.f32 %v3887_v41, %v1942_v31 }
 0xed6   : > { %v1957_v24 = vmul.f32 %v3447_v42, %v1950_v43 }
 0xed8   : > { %v4360_v45 = vadd.f32 %v3448_v44, %v1957_v24 }
 0xeda   : > { %3731 = vmatmul.mubr.msk.f32.vlgmr.msra.gmra.mxu1 %vm707_vm3, %v4360_v45 }
 0xedb   : > { %3735 = vmatprep.mubr.msk.f32.mxu1 %vm3949_vm0, %v3948_v1 }
 0xf9a   : > { %v2072_v47 = vpop.f32.mrf.mxu1 }
 0xf9b   : > { %v4369_v48 = vadd.f32 %v3473_v46, %v2072_v47  ;;  %v3456_v47 = vld [vmem:[%s4580_s6 + $0x30] sm:$0xff] }
 0xf9c   : > { %v3732_v49 = vpop.f32.mrf.mxu1 }
 0xf9d   : > { %2244 = vrot.lane.b32.xlu0 %v4369_v48, %s3950_s19  ;;  %2078 = vrot.lane.b32.xlu1 %v4369_v48, %s3951_s1  ;;  %v4376_v50 = vmul.f32 0.35355338, %v4369_v48  ;;  %s4609_s19 = smov 80   ;;  %s4610_s1 = smov 64  }
 0xfa1   : > { %2242 = vrot.lane.b32.xlu0 %v4376_v50, %s3952_s20  ;;  %s4611_s20 = smov 112  }
0x100f   : > { %v2079_v51 = vpop.permute.xlu1 %2078  ;;  %v2245_v52 = vpop.permute.xlu0 %2244 }
0x1010   : > { %3734 = vmatpush3.xpose.msk.msra.mxu1 %vm785_vm4, %v2079_v51 }
0x1011   : > { %3743 = vmatprep.subr.mxu1 %v3948_v1 }
0x1013   : > { %3736 = vmatmul.mubr.msk.f32.vlgmr.msra.gmra.mxu1 %vm785_vm4, %v4376_v50  ;;  %v2243_v53 = vpop.permute.xlu0 %2242 }
0x1014   : > { %3744 = vmatpush3.xpose.msk.msra.mxu1 %vm785_vm4, %v2245_v52  ;;  %3745 = vmatprep.mubr.msk.f32.mxu1 %vm3949_vm0, %v3948_v1 }
0x1015   : > { %3753 = vmatprep.subr.mxu1 %v3948_v1 }
0x1017   : > { %3746 = vmatmul.mubr.msk.f32.vlgmr.msra.gmra.mxu1 %vm785_vm4, %v2243_v53 }
0x1018   : > { %3755 = vmatprep.mubr.msk.f32.mxu1 %vm3949_vm0, %v3948_v1  ;;  %3754 = vmatpush3.msra.mxu1 %v3455_v17  ;;  %v3461_v17 = vld [vmem:[%s4582_s8 + $0x30] sm:$0xff] }
0x1019   : > { %3763 = vmatprep.subr.mxu1 %v3948_v1 }
0x10d3   : > { %v2151_v54 = vpop.f32.mrf.mxu1 }
0x10d4   : > { %v2152_v55 = vadd.f32 %v2151_v54, %v4180_v30 }
0x10d5   : > { %v3737_v56 = vpop.f32.mrf.mxu1 }
0x10d6   : > { %v2155_v57 = vsel %vm785_vm4, %v2152_v55, -inf }
0x10d7   : > { %2156 = vmax.xlane.f32.xlu0 %v2155_v57  ;;  %v2316_v58 = vpop.f32.mrf.mxu1 }
0x10d8   : > { %v2317_v59 = vadd.f32 %v2316_v58, %v4180_v30 }
0x10d9   : > { %v3747_v21 = vpop.f32.mrf.mxu1 }
0x10da   : > { %v2320_v60 = vsel %vm785_vm4, %v2317_v59, -inf }
0x10db   : > { %2321 = vmax.xlane.f32.xlu1 %v2320_v60 }
0x10ec   : > { %2331 = vrot.lane.b32.xlu1 %v4369_v48, %s3956_s26 }
0x10f0   : > { %2555 = vrot.lane.b32.xlu1 %v4369_v48, %s4609_s19  ;;  %s4615_s19 = smov 40  }
0x1160   : > { %v2157_v61 = vpop.xlane.xlu0 %2156 }
0x1161   : > { %v2158_v62 = vsub.f32 %v2152_v55, %v2157_v61 }
0x1163   : > { %v2159_v63 = vmul.f32 1.442695, %v2158_v62 }
0x1164   : > { %v2322_v0 = vpop.xlane.xlu1 %2321 }
0x1165   : > { %3888 = vpow2.f32 %v2159_v63  ;;  %v2323_v2 = vsub.f32 %v2317_v59, %v2322_v0 }
0x1167   : > { %v2324_v3 = vmul.f32 1.442695, %v2323_v2 }
0x1168   : > { %v2332_v13 = vpop.permute.xlu1 %2331 }
0x1169   : > { %3890 = vpow2.f32 %v2324_v3 }
0x116c   : > { %v2556_v22 = vpop.permute.xlu1 %2555 }
0x1172   : > { %v3889_v4 = vpop.eup %3888 }
0x1173   : > { %v2161_v5 = vsel %vm785_vm4, %v3889_v4, 0.0 }
0x1174   : > { %2162 = vadd.xlane.f32.xlu0 %v2161_v5 }
0x1176   : > { %v3891_v6 = vpop.eup %3890 }
0x1177   : > { %v2326_v7 = vsel %vm785_vm4, %v3891_v6, 0.0 }
0x1178   : > { %2327 = vadd.xlane.f32.xlu0 %v2326_v7 }
0x118e   : > { %2166 = vrot.lane.b32.xlu0 %v4369_v48, %s4610_s1  ;;  %s4616_s1 = sshll.u32 %s4618_s28, 3 }
0x118f   : > { %s583_s24 = scalar_lea.vmem %s4592_s18, %s4616_s1 }
0x1192   : > { %2553 = vrot.lane.b32.xlu0 %v4376_v50, %s4611_s20 }
0x11fd   : > { %v2163_v8 = vpop.xlane.xlu0 %2162 }
0x11fe   : > { %3892 = vrcp.f32 %v2163_v8 }
0x1201   : > { %v2328_v9 = vpop.xlane.xlu0 %2327 }
0x1202   : > { %3894 = vrcp.f32 %v2328_v9 }
0x1205   : > { %v2167_v10 = vpop.permute.xlu0 %2166 }
0x1206   : > { %3739 = vmatpush3.msra.mxu0 %v2167_v10 }
0x1207   : > { %3748 = vmatprep.subr.mxu0 %v3948_v1 }
0x1209   : > { %v2554_v25 = vpop.permute.xlu0 %2553 }
0x120b   : > { %v3893_v11 = vpop.eup %3892 }
0x120c   : > { %v2165_v12 = vmul.f32 %v3893_v11, %v3889_v4  ;;  %v3491_v4 = vld [vmem:[%s4581_s7 + $0x1] ss:$0 sm:$0xff] }
0x120e   : > { %3741 = vmatmul.mubr.msk.f32.vlgmr.msra.gmra.mxu0 %vm785_vm4, %v2165_v12 }
0x120f   : > { %v3895_v14 = vpop.eup %3894  ;;  %3749 = vmatpush3.msra.mxu0 %v2332_v13  ;;  %3750 = vmatprep.mubr.msk.f32.mxu0 %vm3949_vm0, %v3948_v1 }
0x1210   : > { %v2330_v15 = vmul.f32 %v3895_v14, %v3891_v6  ;;  %3758 = vmatprep.subr.mxu0 %v3948_v1 }
0x1212   : > { %3751 = vmatmul.mubr.msk.f32.vlgmr.msra.gmra.mxu0 %vm785_vm4, %v2330_v15 }
0x1213   : > { %3760 = vmatprep.mubr.msk.f32.mxu0 %vm3949_vm0, %v3948_v1  ;;  %3759 = vmatpush3.msra.mxu0 %v3454_v16  ;;  %v3462_v16 = vld [vmem:[%s4582_s8 + $0x38] sm:$0xff] }
0x1214   : > { %3768 = vmatprep.subr.mxu0 %v3948_v1 }
0x12ce   : > { %v2238_v18 = vpop.f32.mrf.mxu0 }
0x12cf   : > { %3761 = vmatmul.mubr.msk.f32.vlgmr.msra.gmra.mxu0 %vm785_vm4, %v2238_v18  ;;  %v3459_v18 = vld [vmem:[%s4582_s8 + $0x20] sm:$0xff] }
0x12d0   : > { %v3742_v19 = vpop.f32.mrf.mxu0  ;;  %3770 = vmatprep.mubr.msk.f32.mxu0 %vm3949_vm0, %v3948_v1 }
0x12d1   : > { %v3471_v19 = vld [vmem:[%s4584_s10 + $0x78] sm:$0xff] }
0x12d2   : > { %v2403_v20 = vpop.f32.mrf.mxu0 }
0x12d3   : > { %3756 = vmatmul.mubr.msk.f32.vlgmr.msra.gmra.mxu1 %vm785_vm4, %v2403_v20  ;;  %v3470_v20 = vld [vmem:[%s4584_s10 + $0x70] sm:$0xff] }
0x12d4   : > { %3764 = vmatpush3.xpose.msk.msra.mxu1 %vm785_vm4, %v2556_v22  ;;  %v3752_v23 = vpop.f32.mrf.mxu0  ;;  %3765 = vmatprep.mubr.msk.f32.mxu1 %vm3949_vm0, %v3948_v1  ;;  %v3469_v22 = vld [vmem:[%s4584_s10 + $0x68] sm:$0xff] }
0x12d5   : > { %3773 = vmatprep.subr.mxu1 %v3948_v1  ;;  %v3468_v23 = vld [vmem:[%s4584_s10 + $0x60] sm:$0xff] }
0x12d7   : > { %3766 = vmatmul.mubr.msk.f32.vlgmr.msra.gmra.mxu1 %vm785_vm4, %v2554_v25  ;;  %v3467_v25 = vld [vmem:[%s4584_s10 + $0x58] sm:$0xff] }
0x12d8   : > { %3775 = vmatprep.mubr.msk.f32.mxu1 %vm3949_vm0, %v3948_v1  ;;  %3774 = vmatpush3.msra.mxu1 %v3456_v47 }
0x12d9   : > { %3783 = vmatprep.subr.mxu1 %v3948_v1 }
0x138f   : > { %v2549_v26 = vpop.f32.mrf.mxu0 }
0x1391   : > { %v3762_v27 = vpop.f32.mrf.mxu0 }
0x1393   : > { %v2476_v28 = vpop.f32.mrf.mxu1 }
0x1394   : > { %v2550_v29 = vadd.f32 %v2549_v26, %v2476_v28 }
0x1395   : > { %v3757_v31 = vpop.f32.mrf.mxu1 }
0x1396   : > { %v3494_v31 = vld [vmem:[%s4586_s12 + $0x1] ss:$0 sm:$0xff] }
0x1397   : > { %v2627_v32 = vpop.f32.mrf.mxu1 }
0x1398   : > { %v2628_v33 = vadd.f32 %v2627_v32, %v4180_v30 }
0x1399   : > { %v3767_v34 = vpop.f32.mrf.mxu1 }
0x139a   : > { %v2631_v35 = vsel %vm785_vm4, %v2628_v33, -inf }
0x139b   : > { %2632 = vmax.xlane.f32.xlu1 %v2631_v35 }
0x13ac   : > { %2794 = vrot.lane.b32.xlu1 %v4369_v48, %s4612_s22 }
0x13b0   : > { %2792 = vrot.lane.b32.xlu1 %v4376_v50, %s4613_s29 }
0x1424   : > { %v2633_v36 = vpop.xlane.xlu1 %2632 }
0x1425   : > { %v2634_v37 = vsub.f32 %v2628_v33, %v2633_v36  ;;  %v3495_v33 = vld [vmem:[%s4587_s13 + $0x1] ss:$0 sm:$0xff]  ;;  %v3466_v36 = vld [vmem:[%s4584_s10 + $0x50] sm:$0xff] }
0x1427   : > { %v2635_v38 = vmul.f32 1.442695, %v2634_v37  ;;  %v3465_v37 = vld [vmem:[%s4584_s10 + $0x48] sm:$0xff] }
0x1428   : > { %v2795_v44 = vpop.permute.xlu1 %2794 }
0x1429   : > { %3896 = vpow2.f32 %v2635_v38  ;;  %v3464_v38 = vld [vmem:[%s4584_s10 + $0x40] sm:$0xff] }
0x142c   : > { %v2793_v46 = vpop.permute.xlu1 %2792 }
0x1436   : > { %v3897_v39 = vpop.eup %3896 }
0x1437   : > { %v2637_v40 = vsel %vm785_vm4, %v3897_v39, 0.0 }
0x1438   : > { %2638 = vadd.xlane.f32.xlu0 %v2637_v40 }
0x144e   : > { %2642 = vrot.lane.b32.xlu0 %v4369_v48, %s4614_s2 }
0x14c1   : > { %v2639_v41 = vpop.xlane.xlu0 %2638 }
0x14c2   : > { %3898 = vrcp.f32 %v2639_v41 }
0x14c5   : > { %v2643_v42 = vpop.permute.xlu0 %2642 }
0x14c6   : > { %3769 = vmatpush3.msra.mxu0 %v2643_v42 }
0x14c7   : > { %3778 = vmatprep.subr.mxu0 %v3948_v1 }
0x14cf   : > { %v3899_v43 = vpop.eup %3898 }
0x14d0   : > { %v2641_v24 = vmul.f32 %v3899_v43, %v3897_v39  ;;  %v3496_v39 = vld [vmem:[%s4583_s9 + $0x1] ss:$0 sm:$0xff] }
0x14d2   : > { %3771 = vmatmul.mubr.msk.f32.vlgmr.msra.gmra.mxu0 %vm785_vm4, %v2641_v24 }
0x14d3   : > { %3779 = vmatpush3.xpose.msk.msra.mxu0 %vm785_vm4, %v2795_v44  ;;  %3780 = vmatprep.mubr.msk.f32.mxu0 %vm3949_vm0, %v3948_v1  ;;  %v3498_v44 = vld [vmem:[%s4585_s11 + $0x1] ss:$0 sm:$0xff] }
0x14d4   : > { %3788 = vmatprep.subr.mxu0 %v3948_v1 }
0x14d6   : > { %3781 = vmatmul.mubr.msk.f32.vlgmr.msra.gmra.mxu0 %vm785_vm4, %v2793_v46 }
0x14d7   : > { %3790 = vmatprep.mubr.msk.f32.mxu0 %vm3949_vm0, %v3948_v1 }
0x1592   : > { %v2714_v49 = vpop.f32.mrf.mxu0 }
0x1593   : > { %3776 = vmatmul.mubr.msk.f32.vlgmr.msra.gmra.mxu1 %vm785_vm4, %v2714_v49 }
0x1594   : > { %v3772_v50 = vpop.f32.mrf.mxu0  ;;  %3785 = vmatprep.mubr.msk.f32.mxu1 %vm3949_vm0, %v3948_v1 }
0x1596   : > { %v2866_v51 = vpop.f32.mrf.mxu0 }
0x1597   : > { %v2867_v52 = vadd.f32 %v2866_v51, %v4180_v30  ;;  %v3457_v30 = vld [vmem:[%s4580_s6 + $0x38] sm:$0xff] }
0x1598   : > { %v3782_v53 = vpop.f32.mrf.mxu0  ;;  %3789 = vmatpush3.msra.mxu0 %v3457_v30 }
0x1599   : > { %v2870_v54 = vsel %vm785_vm4, %v2867_v52, -inf  ;;  %3804 = vmatprep.subr.mxu0 %v3948_v1 }
0x159a   : > { %2871 = vmax.xlane.f32.xlu0 %v2870_v54 }
0x15b0   : > { %2881 = vrot.lane.b32.xlu0 %v4369_v48, %s4615_s19 }
0x1623   : > { %v2872_v55 = vpop.xlane.xlu0 %2871 }
0x1624   : > { %v2873_v56 = vsub.f32 %v2867_v52, %v2872_v55 }
0x1626   : > { %v2874_v57 = vmul.f32 1.442695, %v2873_v56  ;;  %v3264_v56 = vld [vmem:[%s4590_s16 + $0x18] sm:$0xff] }
0x1627   : > { %v2882_v58 = vpop.permute.xlu0 %2881 }
0x1628   : > { %3900 = vpow2.f32 %v2874_v57  ;;  %3784 = vmatpush3.msra.mxu1 %v2882_v58  ;;  %v3263_v57 = vld [vmem:[%s4590_s16 + $0x10] sm:$0xff]  ;;  %v3262_v58 = vld [vmem:[%s4590_s16 + $0x8] sm:$0xff] }
0x1629   : > { %3793 = vmatprep.subr.mxu1 %v3948_v1 }
0x1635   : > { %v3901_v59 = vpop.eup %3900 }
0x1636   : > { %v2876_v21 = vsel %vm785_vm4, %v3901_v59, 0.0 }
0x1637   : > { %2877 = vadd.xlane.f32.xlu1 %v2876_v21 }
0x1653   : > { %v2787_v60 = vpop.f32.mrf.mxu1 }
0x1654   : > { %v2791_v48 = vadd.f32 %v2787_v60, %v2550_v29 }
0x1655   : > { %v3777_v61 = vpop.f32.mrf.mxu1 }
0x1656   : > { %v3502_v61 = vld [vmem:[%s4588_s14 + $0x1] ss:$0 sm:$0xff] }
0x16c0   : > { %v2878_v62 = vpop.xlane.xlu1 %2877 }
0x16c1   : > { %3902 = vrcp.f32 %v2878_v62 }
0x16ce   : > { %v3903_v63 = vpop.eup %3902 }
0x16cf   : > { %v2880_v0 = vmul.f32 %v3903_v63, %v3901_v59  ;;  %v3261_v59 = vld [vmem:[%s4590_s16] sm:$0xff] }
0x16d0   : > { %v3503_v63 = vld [vmem:[%s4589_s15 + $0x1] ss:$0 sm:$0xff] }
0x16d1   : > { %3786 = vmatmul.mubr.msk.f32.vlgmr.msra.gmra.mxu1 %vm785_vm4, %v2880_v0 }
0x16d2   : > { %3801 = vmatprep.mubr.msk.f32.mxu1 %vm3949_vm0, %v3948_v1  ;;  %3794 = vmatpush3.msra.mxu1 %v3462_v16 }
0x16d3   : > { %3795 = vmatprep.subr.mxu1 %v3948_v1 }
0x16d4   : > { %3796 = vmatpush3.msra.mxu1 %v3461_v17 }
0x16d5   : > { %3797 = vmatprep.subr.mxu1 %v3948_v1 }
0x1791   : > { %v2953_v2 = vpop.f32.mrf.mxu1 }
0x1792   : > { %3791 = vmatmul.mubr.msk.f32.vlgmr.msra.gmra.mxu0 %vm785_vm4, %v2953_v2 }
0x1793   : > { %v3787_v3 = vpop.f32.mrf.mxu1  ;;  %3820 = vmatprep.mubr.msk.f32.mxu0 %vm3949_vm0, %v3948_v1  ;;  %3805 = vmatpush3.msra.mxu0 %v3471_v19 }
0x1794   : > { %3806 = vmatprep.subr.mxu0 %v3948_v1 }
0x1795   : > { %3807 = vmatpush3.msra.mxu0 %v3470_v20 }
0x1796   : > { %3808 = vmatprep.subr.mxu0 %v3948_v1 }
0x1797   : > { %3809 = vmatpush3.msra.mxu0 %v3469_v22 }
0x1798   : > { %3810 = vmatprep.subr.mxu0 %v3948_v1 }
0x1799   : > { %3811 = vmatpush3.msra.mxu0 %v3468_v23 }
0x179a   : > { %3812 = vmatprep.subr.mxu0 %v3948_v1 }
0x179b   : > { %3813 = vmatpush3.msra.mxu0 %v3467_v25 }
0x179c   : > { %3814 = vmatprep.subr.mxu0 %v3948_v1 }
0x179d   : > { %3815 = vmatpush3.msra.mxu0 %v3466_v36 }
0x179e   : > { %3816 = vmatprep.subr.mxu0 %v3948_v1 }
0x179f   : > { %3817 = vmatpush3.msra.mxu0 %v3465_v37 }
0x17a0   : > { %3818 = vmatprep.subr.mxu0 %v3948_v1 }
0x17a1   : > { %3819 = vmatpush3.msra.mxu0 %v3464_v38 }
0x1852   : > { %v3026_v5 = vpop.f32.mrf.mxu0 }
0x1853   : > { %v3030_v6 = vadd.f32 %v3026_v5, %v2791_v48 }
0x1854   : > { %v3792_v7 = vpop.f32.mrf.mxu0 }
0x1855   : > { %v3037_v8 = vadd.f32 %v3491_v4, %v3030_v6 }
0x1857   : > { %v3038_v9 = vadd.f32 %v3037_v8, %v4360_v45  ;;  %v3460_v45 = vld [vmem:[%s4582_s8 + $0x28] sm:$0xff] }
0x1858   : > { %3798 = vmatpush3.msra.mxu1 %v3460_v45 }
0x1859   : > { %v3043_v10 = vsel %vm707_vm3, %v3038_v9, 0.0  ;;  %3799 = vmatprep.subr.mxu1 %v3948_v1 }
0x185a   : > { %3044 = vadd.xlane.f32.xlu1 %v3043_v10  ;;  %3800 = vmatpush3.msra.mxu1 %v3459_v18 }
0x185b   : > { %3823 = vmatprep.subr.mxu1 %v3948_v1 }
0x18e3   : > { %v3045_v11 = vpop.xlane.xlu1 %3044 }
0x18e4   : > { %v3046_v12 = vmul.f32 0.03125, %v3045_v11 }
0x18e6   : > { %v3047_v13 = vsub.f32 %v3038_v9, %v3046_v12 }
0x18e8   : > { %v3048_v14 = vmul.f32 %v3047_v13, %v3047_v13 }
0x18ea   : > { %v3049_v15 = vsel %vm707_vm3, %v3048_v14, 0.0 }
0x18eb   : > { %3050 = vadd.xlane.f32.xlu1 %v3049_v15 }
0x1974   : > { %v3051_v26 = vpop.xlane.xlu1 %3050 }
0x1975   : > { %v3052_v27 = vmul.f32 0.03125, %v3051_v26 }
0x1977   : > { %v3053_v28 = vadd.f32 1e-05, %v3052_v27 }
0x1979   : > { %3904 = vrsqrt.f32 %v3053_v28 }
0x1986   : > { %v3905_v29 = vpop.eup %3904 }
0x1987   : > { %v3055_v32 = vmul.f32 %v3905_v29, %v3047_v13 }
0x1989   : > { %v3062_v34 = vmul.f32 %v3494_v31, %v3055_v32 }
0x198b   : > { %v3069_v35 = vadd.f32 %v3495_v33, %v3062_v34 }
0x198d   : > { %3802 = vmatmul.mubr.msk.f32.vlgmr.msra.gmra.mxu1 %vm707_vm3, %v3069_v35 }
0x198e   : > { %3831 = vmatprep.mubr.msk.f32.mxu1 %vm3949_vm0, %v3948_v1  ;;  %3824 = vmatpush3.msra.mxu1 %v3264_v56 }
0x198f   : > { %3825 = vmatprep.subr.mxu1 %v3948_v1 }
0x1990   : > { %3826 = vmatpush3.msra.mxu1 %v3263_v57 }
0x1991   : > { %3827 = vmatprep.subr.mxu1 %v3948_v1 }
0x1992   : > { %3828 = vmatpush3.msra.mxu1 %v3262_v58 }
0x1993   : > { %3829 = vmatprep.subr.mxu1 %v3948_v1  ;;  %v3504_v1 = vld [vmem:[#allocation2] ss:$0 sm:$0xff] }
0x1994   : > { %3830 = vmatpush3.msra.mxu1 %v3261_v59 }
0x1a4d   : > { %v3145_v40 = vpop.f32.mrf.mxu1 }
0x1a4e   : > { %v3146_v41 = vadd.f32 %v3496_v39, %v3145_v40 }
0x1a4f   : > { %v3803_v42 = vpop.f32.mrf.mxu1 }
0x1a50   : > { %v3149_v43 = vmax.f32 %v3146_v41, 0.0 }
0x1a52   : > { %3821 = vmatmul.mubr.msk.f32.vlgmr.msra.gmra.mxu0 %vm1861_vm5, %v3149_v43 }
0x1b12   : > { %v3225_v24 = vpop.f32.mrf.mxu0 }
0x1b13   : > { %v3226_v46 = vadd.f32 %v3498_v44, %v3225_v24 }
0x1b14   : > { %v3822_v47 = vpop.f32.mrf.mxu0 }
0x1b15   : > { %v3229_v49 = vadd.f32 %v3226_v46, %v3069_v35 }
0x1b17   : > { %v3234_v50 = vsel %vm707_vm3, %v3229_v49, 0.0 }
0x1b18   : > { %3235 = vadd.xlane.f32.xlu1 %v3234_v50 }
0x1ba1   : > { %v3236_v51 = vpop.xlane.xlu1 %3235 }
0x1ba2   : > { %v3237_v52 = vmul.f32 0.03125, %v3236_v51 }
0x1ba4   : > { %v3238_v53 = vsub.f32 %v3229_v49, %v3237_v52 }
0x1ba6   : > { %v3239_v54 = vmul.f32 %v3238_v53, %v3238_v53 }
0x1ba8   : > { %v3240_v55 = vsel %vm707_vm3, %v3239_v54, 0.0 }
0x1ba9   : > { %3241 = vadd.xlane.f32.xlu1 %v3240_v55 }
0x1c32   : > { %v3242_v21 = vpop.xlane.xlu1 %3241 }
0x1c33   : > { %v3243_v30 = vmul.f32 0.03125, %v3242_v21 }
0x1c35   : > { %v3244_v60 = vadd.f32 1e-05, %v3243_v30 }
0x1c37   : > { %3906 = vrsqrt.f32 %v3244_v60 }
0x1c44   : > { %v3907_v48 = vpop.eup %3906 }
0x1c45   : > { %v3246_v62 = vmul.f32 %v3907_v48, %v3238_v53 }
0x1c47   : > { %v3253_v0 = vmul.f32 %v3502_v61, %v3246_v62 }
0x1c49   : > { %v3260_v2 = vadd.f32 %v3503_v63, %v3253_v0 }
0x1c4b   : > { %3832 = vmatmul.mubr.msk.f32.vlgmr.msra.gmra.mxu1 %vm707_vm3, %v3260_v2 }
0x1d0b   : > { %v3341_v3 = vpop.f32.mrf.mxu1 }
0x1d0c   : > { %v3342_v4 = vadd.f32 %v3504_v1, %v3341_v3 }
0x1d0d   : > { %v3833_v5 = vpop.f32.mrf.mxu1 }
0x1d0e   : > { %3345 = vst [vmem:[%s583_s24] sm:$0xff] %v3342_v4 }
0x1d0f PF: > { %s29_s27 = sadd.s32 1, %s3944_s27  }
0x1d10   : > { %p26_p1 = scmp.ge.s32.totalorder %s29_s27, 4  }
0x1d12   :  { %28 = sbr.rel (!%p26_p1) target bundleno = 5 (0x5), region = 139 }
0x1d17   :  { %3365 = vsyncpa [#allocation3], 1 }
0x1d18   :  { %3367 = vsyncpa [#allocation3 + $0x1], 1 }

</bundles_post_ra>
